<compile_context>
chip_gen: v7x
topology: tpu7x:2x2x1
jax: 0.10.0
libtpu: 0.0.40
codegen_flags: <defaults>
</compile_context>

<pallas_src>
import jax
import jax.numpy as jnp
import numpy as np
from jax.experimental import pallas as pl
from jax.experimental.pallas import tpu as pltpu


def _round_up(n, m):
    return ((n + m - 1) // m) * m


def vae_kernel(x_ref, we_ref, be_ref, wmv_ref, bmv_ref,
               wd1_ref, bd1_ref, wd2_ref, bd2_ref, eps_ref,
               xrec_ref, mv_ref):
    z_size = eps_ref.shape[-1]

    # ---- Encoder: Linear(x_size -> h_size) + ReLU -------------------------
    # x arrives at its native f32 dtype (no separate wrapper cast pass);
    # downcast to bf16 for the MXU happens here, in-register.
    x = x_ref[...].astype(jnp.bfloat16)
    h = jnp.dot(x, we_ref[...],
                preferred_element_type=jnp.float32) + be_ref[...]
    h = jnp.maximum(h, 0.0)                                    # f32

    # ---- Fused latent heads: one [h_size, 2*z_size] matmul ----------------
    mv = jnp.dot(h.astype(jnp.bfloat16), wmv_ref[...],
                 preferred_element_type=jnp.float32) + bmv_ref[...]
    mv_ref[...] = mv            # single merged output [mu | logvar], split in wrapper

    mu = mv[:, :z_size]
    logvar = mv[:, z_size:]

    # ---- Reparameterization (f32): z = mu + exp(0.5*logvar) * eps ---------
    z = mu + jnp.exp(0.5 * logvar) * eps_ref[...]

    # ---- Decoder: Linear(z -> 256pad) + ReLU, Linear(256pad -> x_size) ----
    d1 = jnp.dot(z.astype(jnp.bfloat16), wd1_ref[...],
                 preferred_element_type=jnp.float32) + bd1_ref[...]
    d1 = jnp.maximum(d1, 0.0)
    d2 = jnp.dot(d1.astype(jnp.bfloat16), wd2_ref[...],
                 preferred_element_type=jnp.float32) + bd2_ref[...]

    # Sigmoid: exp on EUP, approx reciprocal (vrcp) on EUP -> VPU slot stays free.
    x_recon = pl.reciprocal(1.0 + jnp.exp(-d2), approx=True)
    xrec_ref[...] = x_recon.astype(xrec_ref.dtype)             # bf16 writeback


def vae_forward(x_nchw, params, eps, *, batch_tile=512):
    """Fused VAE-MLP forward. Returns (x_recon[bf16], mu[f32], log_variance[f32])."""
    B = x_nchw.shape[0]
    x = x_nchw.reshape(B, -1)                                  # f32, no cast/pad materialized
    x_size = x.shape[1]
    h_size = params["W_enc"].shape[1]
    z_size = params["W_mu"].shape[1]
    dec_hidden = params["W_d1"].shape[1]
    dec_hidden_pad = _round_up(dec_hidden, 128)                # 200 -> 256

    # ---- Batch tile selection ---------------------------------------------
    # * B <= batch_tile: one tile of exactly B rows (block == full array dim,
    #   so any B is layout-legal; no batch padding, no trailing slice copy).
    #   If B is big enough, split in two so v7x's 2nd TensorCore gets a step.
    # * B  > batch_tile: 512-row tiles (multiple of 256), pad only if needed.
    if B <= batch_tile:
        TB = B // 2 if (B >= 64 and B % 32 == 0) else B
        B_pad = B
    else:
        TB = batch_tile
        B_pad = _round_up(B, TB)

    # ---- Pack / pad parameters (one-time, tiny layout plumbing) ------------
    f32, bf16 = jnp.float32, jnp.bfloat16
    w_enc = params["W_enc"].astype(bf16)
    b_enc = params["b_enc"].astype(f32)
    w_mv = jnp.concatenate([params["W_mu"], params["W_sigma"]], axis=1).astype(bf16)
    b_mv = jnp.concatenate([params["b_mu"], params["b_sigma"]], axis=1).astype(f32)
    pad_c = dec_hidden_pad - dec_hidden
    w_d1 = jnp.pad(params["W_d1"], ((0, 0), (0, pad_c))).astype(bf16)
    b_d1 = jnp.pad(params["b_d1"], ((0, 0), (0, pad_c))).astype(f32)
    w_d2 = jnp.pad(params["W_d2"], ((0, pad_c), (0, 0))).astype(bf16)
    b_d2 = params["b_d2"].astype(f32)

    eps = eps.astype(f32)
    if B_pad != B:
        # Only reached when B > batch_tile and B is not tile-divisible.
        x_in = jnp.pad(x, ((0, B_pad - B), (0, 0)))
        eps_in = jnp.pad(eps, ((0, B_pad - B), (0, 0)))
    else:
        x_in, eps_in = x, eps

    grid = (B_pad // TB,)

    def batch_spec(n):
        # Streamed per batch tile.
        return pl.BlockSpec((TB, n), lambda i: (i, 0))

    def weight_spec(shape):
        # Constant block index -> stays VMEM-resident across grid steps, no re-DMA.
        # (pipeline_mode=pl.Buffered(1) would also drop the redundant second
        #  weight buffer; left at default pending support on the installed jax.)
        return pl.BlockSpec(shape, lambda i: (0, 0))

    # Advisory cost hint so XLA can overlap this call with surrounding ops.
    matmul_elems = (x_size * h_size + h_size * 2 * z_size
                    + z_size * dec_hidden_pad + dec_hidden_pad * x_size)
    weight_bytes = 2 * matmul_elems                                     # bf16 weights
    bias_bytes = 4 * (h_size + 2 * z_size + dec_hidden_pad + x_size)    # f32 biases
    cost = pl.CostEstimate(
        flops=2 * B_pad * matmul_elems,
        transcendentals=B_pad * (z_size + x_size),                      # reparam exp + sigmoid exp
        bytes_accessed=(4 * B_pad * (x_size + z_size)                   # x + eps in (f32)
                        + weight_bytes + bias_bytes
                        + 2 * B_pad * x_size                            # x_recon out (bf16)
                        + 4 * B_pad * 2 * z_size))                      # [mu|logvar] out (f32)

    x_recon, mv = pl.pallas_call(
        vae_kernel,
        out_shape=(
            jax.ShapeDtypeStruct((B_pad, x_size), jnp.bfloat16),        # x_recon (bf16)
            jax.ShapeDtypeStruct((B_pad, 2 * z_size), jnp.float32),     # [mu | logvar]
        ),
        grid_spec=pltpu.PrefetchScalarGridSpec(
            num_scalar_prefetch=0,
            grid=grid,
            in_specs=[
                batch_spec(x_size),
                weight_spec(w_enc.shape), weight_spec(b_enc.shape),
                weight_spec(w_mv.shape), weight_spec(b_mv.shape),
                weight_spec(w_d1.shape), weight_spec(b_d1.shape),
                weight_spec(w_d2.shape), weight_spec(b_d2.shape),
                batch_spec(z_size),
            ],
            out_specs=[batch_spec(x_size), batch_spec(2 * z_size)],
        ),
        compiler_params=pltpu.CompilerParams(
            dimension_semantics=("parallel",)),
        cost_estimate=cost,
    )(x_in, w_enc, b_enc, w_mv, b_mv, w_d1, b_d1, w_d2, b_d2, eps_in)

    if B_pad != B:
        x_recon, mv = x_recon[:B], mv[:B]
    mu = mv[:, :z_size]
    log_variance = mv[:, z_size:]
    return x_recon, mu, log_variance


def init_params(key, x_size, h_size, z_size, dec_hidden=200):
    # Deterministic synthetic init (weights stored as [in, out]; same math as
    # torch Linear's x @ W.T + b with W [out, in]).
    ks = jax.random.split(key, 10)

    def w(k, fan_in, fan_out):
        return (jax.random.normal(k, (fan_in, fan_out), jnp.float32)
                / jnp.sqrt(jnp.float32(fan_in)))

    def b(k, fan_out):
        return 0.01 * jax.random.normal(k, (1, fan_out), jnp.float32)

    return {
        "W_enc":   w(ks[0], x_size, h_size),     "b_enc":   b(ks[1], h_size),
        "W_mu":    w(ks[2], h_size, z_size),     "b_mu":    b(ks[3], z_size),
        "W_sigma": w(ks[4], h_size, z_size),     "b_sigma": b(ks[5], z_size),
        "W_d1":    w(ks[6], z_size, dec_hidden), "b_d1":    b(ks[7], dec_hidden),
        "W_d2":    w(ks[8], dec_hidden, x_size), "b_d2":    b(ks[9], x_size),
    }


def vae_reference(x_nchw, params, eps):
    # Pure-JAX f32 reference of the torch forward (for a loose bf16-tolerance check).
    B = x_nchw.shape[0]
    x = x_nchw.reshape(B, -1).astype(jnp.float32)
    h = jnp.maximum(x @ params["W_enc"] + params["b_enc"], 0.0)
    mu = h @ params["W_mu"] + params["b_mu"]
    logvar = h @ params["W_sigma"] + params["b_sigma"]
    z = mu + jnp.exp(0.5 * logvar) * eps
    d1 = jnp.maximum(z @ params["W_d1"] + params["b_d1"], 0.0)
    d2 = d1 @ params["W_d2"] + params["b_d2"]
    return jax.nn.sigmoid(d2), mu, logvar


if __name__ == "__main__":
    # Small shapes consistent with the module: x is NCHW, flattened to x_size.
    B, C, H, W = 2, 4, 16, 16
    x_size = C * H * W          # 1024
    h_size = 32
    z_size = 8

    key = jax.random.PRNGKey(0)
    k_x, k_eps, k_p = jax.random.split(key, 3)

    x = jax.random.uniform(k_x, (B, C, H, W), jnp.float32)
    eps = jax.random.normal(k_eps, (B, z_size), jnp.float32)   # reparam noise
    params = init_params(k_p, x_size, h_size, z_size)

    x_recon, mu, log_variance = vae_forward(x, params, eps)
    jax.block_until_ready((x_recon, mu, log_variance))

    assert x_recon.shape == (B, x_size)
    assert x_recon.dtype == jnp.bfloat16
    assert mu.shape == (B, z_size)
    assert log_variance.shape == (B, z_size)

    # Loose check vs. f32 reference (kernel matmuls are bf16 w/ f32 accumulation,
    # x_recon is returned in bf16).
    xr_ref, mu_ref, lv_ref = vae_reference(x, params, eps)
    np.testing.assert_allclose(np.asarray(x_recon.astype(jnp.float32)),
                               np.asarray(xr_ref), atol=1e-1, rtol=1e-1)
    np.testing.assert_allclose(np.asarray(mu), np.asarray(mu_ref),
                               atol=1e-1, rtol=1e-1)
    np.testing.assert_allclose(np.asarray(log_variance), np.asarray(lv_ref),
                               atol=1e-1, rtol=1e-1)

    print("KERNEL_OK")
</pallas_src>

<mosaic_0001>
module attributes {stable_mosaic.version = 11 : i64} {
  func.func @vae_kernel(%arg0: i32, %arg1: memref<2x1024xf32, #tpu.memory_space<vmem>>, %arg2: memref<1024x32xbf16, #tpu.memory_space<vmem>>, %arg3: memref<1x32xf32, #tpu.memory_space<vmem>>, %arg4: memref<32x16xbf16, #tpu.memory_space<vmem>>, %arg5: memref<1x16xf32, #tpu.memory_space<vmem>>, %arg6: memref<8x256xbf16, #tpu.memory_space<vmem>>, %arg7: memref<1x256xf32, #tpu.memory_space<vmem>>, %arg8: memref<256x1024xbf16, #tpu.memory_space<vmem>>, %arg9: memref<1x1024xf32, #tpu.memory_space<vmem>>, %arg10: memref<2x8xf32, #tpu.memory_space<vmem>>, %arg11: memref<2x1024xbf16, #tpu.memory_space<vmem>>, %arg12: memref<2x16xf32, #tpu.memory_space<vmem>>) attributes {dimension_semantics = [#tpu.dimension_semantics<parallel>], iteration_bounds = array<i64: 1>, scalar_prefetch = 0 : i64, scratch_operands = 0 : i64, tpu.core_type = #tpu.core_type<tc>, window_params = [{transform_indices = @transform_0, window_bounds = array<i64: 2, 1024>}, {pipeline_mode = #tpu.pipeline_mode<synchronous>, transform_indices = @transform_1, window_bounds = array<i64: 1024, 32>}, {pipeline_mode = #tpu.pipeline_mode<synchronous>, transform_indices = @transform_2, window_bounds = array<i64: 1, 32>}, {pipeline_mode = #tpu.pipeline_mode<synchronous>, transform_indices = @transform_3, window_bounds = array<i64: 32, 16>}, {pipeline_mode = #tpu.pipeline_mode<synchronous>, transform_indices = @transform_4, window_bounds = array<i64: 1, 16>}, {pipeline_mode = #tpu.pipeline_mode<synchronous>, transform_indices = @transform_5, window_bounds = array<i64: 8, 256>}, {pipeline_mode = #tpu.pipeline_mode<synchronous>, transform_indices = @transform_6, window_bounds = array<i64: 1, 256>}, {pipeline_mode = #tpu.pipeline_mode<synchronous>, transform_indices = @transform_7, window_bounds = array<i64: 256, 1024>}, {pipeline_mode = #tpu.pipeline_mode<synchronous>, transform_indices = @transform_8, window_bounds = array<i64: 1, 1024>}, {transform_indices = @transform_9, window_bounds = array<i64: 2, 8>}, {transform_indices = @transform_10, window_bounds = array<i64: 2, 1024>}, {transform_indices = @transform_11, window_bounds = array<i64: 2, 16>}]} {
    %c0 = arith.constant 0 : index
    %c0_0 = arith.constant 0 : index
    %0 = vector.load %arg1[%c0, %c0_0] : memref<2x1024xf32, #tpu.memory_space<vmem>>, vector<2x1024xf32>
    %1 = arith.truncf %0 : vector<2x1024xf32> to vector<2x1024xbf16>
    %c0_1 = arith.constant 0 : index
    %c0_2 = arith.constant 0 : index
    %2 = vector.load %arg2[%c0_1, %c0_2] : memref<1024x32xbf16, #tpu.memory_space<vmem>>, vector<1024x32xbf16>
    %cst = arith.constant dense<0.000000e+00> : vector<2x32xf32>
    %3 = tpu.matmul %1, %2, %cst {dimension_numbers = #tpu.dot_dimension_numbers<[1], [0], [0], [1], [0, 0, 1, 1], [], []>} : vector<2x1024xbf16>, vector<1024x32xbf16>, vector<2x32xf32> -> vector<2x32xf32>
    %c0_3 = arith.constant 0 : index
    %c0_4 = arith.constant 0 : index
    %4 = vector.load %arg3[%c0_3, %c0_4] : memref<1x32xf32, #tpu.memory_space<vmem>>, vector<1x32xf32>
    %5 = vector.broadcast %4 : vector<1x32xf32> to vector<2x32xf32>
    %6 = arith.addf %3, %5 : vector<2x32xf32>
    %cst_5 = arith.constant 0.000000e+00 : f32
    %7 = vector.broadcast %cst_5 : f32 to vector<2x32xf32>
    %8 = arith.maximumf %6, %7 : vector<2x32xf32>
    %9 = arith.truncf %8 : vector<2x32xf32> to vector<2x32xbf16>
    %c0_6 = arith.constant 0 : index
    %c0_7 = arith.constant 0 : index
    %10 = vector.load %arg4[%c0_6, %c0_7] : memref<32x16xbf16, #tpu.memory_space<vmem>>, vector<32x16xbf16>
    %cst_8 = arith.constant dense<0.000000e+00> : vector<2x16xf32>
    %11 = tpu.matmul %9, %10, %cst_8 {dimension_numbers = #tpu.dot_dimension_numbers<[1], [0], [0], [1], [0, 0, 1, 1], [], []>} : vector<2x32xbf16>, vector<32x16xbf16>, vector<2x16xf32> -> vector<2x16xf32>
    %c0_9 = arith.constant 0 : index
    %c0_10 = arith.constant 0 : index
    %12 = vector.load %arg5[%c0_9, %c0_10] : memref<1x16xf32, #tpu.memory_space<vmem>>, vector<1x16xf32>
    %13 = vector.broadcast %12 : vector<1x16xf32> to vector<2x16xf32>
    %14 = arith.addf %11, %13 : vector<2x16xf32>
    %c0_11 = arith.constant 0 : index
    %c0_12 = arith.constant 0 : index
    %15 = vector.load %arg12[%c0_11, %c0_12] : memref<2x16xf32, #tpu.memory_space<vmem>>, vector<2x16xf32>
    tpu.vector_store %arg12[%c0_11, %c0_12], %14 {strides = array<i32>} : memref<2x16xf32, #tpu.memory_space<vmem>>, vector<2x16xf32>,
    %16 = vector.extract_strided_slice %14 {offsets = [0, 0], sizes = [2, 8], strides = [1, 1]} : vector<2x16xf32> to vector<2x8xf32>
    %17 = vector.extract_strided_slice %14 {offsets = [0, 8], sizes = [2, 8], strides = [1, 1]} : vector<2x16xf32> to vector<2x8xf32>
    %cst_13 = arith.constant 5.000000e-01 : f32
    %18 = vector.broadcast %cst_13 : f32 to vector<2x8xf32>
    %19 = arith.mulf %18, %17 : vector<2x8xf32>
    %20 = math.exp %19 : vector<2x8xf32>
    %c0_14 = arith.constant 0 : index
    %c0_15 = arith.constant 0 : index
    %21 = vector.load %arg10[%c0_14, %c0_15] : memref<2x8xf32, #tpu.memory_space<vmem>>, vector<2x8xf32>
    %22 = arith.mulf %20, %21 : vector<2x8xf32>
    %23 = arith.addf %16, %22 : vector<2x8xf32>
    %24 = arith.truncf %23 : vector<2x8xf32> to vector<2x8xbf16>
    %c0_16 = arith.constant 0 : index
    %c0_17 = arith.constant 0 : index
    %25 = vector.load %arg6[%c0_16, %c0_17] : memref<8x256xbf16, #tpu.memory_space<vmem>>, vector<8x256xbf16>
    %cst_18 = arith.constant dense<0.000000e+00> : vector<2x256xf32>
    %26 = tpu.matmul %24, %25, %cst_18 {dimension_numbers = #tpu.dot_dimension_numbers<[1], [0], [0], [1], [0, 0, 1, 1], [], []>} : vector<2x8xbf16>, vector<8x256xbf16>, vector<2x256xf32> -> vector<2x256xf32>
    %c0_19 = arith.constant 0 : index
    %c0_20 = arith.constant 0 : index
    %27 = vector.load %arg7[%c0_19, %c0_20] : memref<1x256xf32, #tpu.memory_space<vmem>>, vector<1x256xf32>
    %28 = vector.broadcast %27 : vector<1x256xf32> to vector<2x256xf32>
    %29 = arith.addf %26, %28 : vector<2x256xf32>
    %cst_21 = arith.constant 0.000000e+00 : f32
    %30 = vector.broadcast %cst_21 : f32 to vector<2x256xf32>
    %31 = arith.maximumf %29, %30 : vector<2x256xf32>
    %32 = arith.truncf %31 : vector<2x256xf32> to vector<2x256xbf16>
    %c0_22 = arith.constant 0 : index
    %c0_23 = arith.constant 0 : index
    %33 = vector.load %arg8[%c0_22, %c0_23] : memref<256x1024xbf16, #tpu.memory_space<vmem>>, vector<256x1024xbf16>
    %cst_24 = arith.constant dense<0.000000e+00> : vector<2x1024xf32>
    %34 = tpu.matmul %32, %33, %cst_24 {dimension_numbers = #tpu.dot_dimension_numbers<[1], [0], [0], [1], [0, 0, 1, 1], [], []>} : vector<2x256xbf16>, vector<256x1024xbf16>, vector<2x1024xf32> -> vector<2x1024xf32>
    %c0_25 = arith.constant 0 : index
    %c0_26 = arith.constant 0 : index
    %35 = vector.load %arg9[%c0_25, %c0_26] : memref<1x1024xf32, #tpu.memory_space<vmem>>, vector<1x1024xf32>
    %36 = vector.broadcast %35 : vector<1x1024xf32> to vector<2x1024xf32>
    %37 = arith.addf %34, %36 : vector<2x1024xf32>
    %cst_27 = arith.constant 0.000000e+00 : f32
    %38 = vector.broadcast %cst_27 : f32 to vector<2x1024xf32>
    %39 = arith.subf %38, %37 : vector<2x1024xf32>
    %40 = math.exp %39 : vector<2x1024xf32>
    %cst_28 = arith.constant 1.000000e+00 : f32
    %41 = vector.broadcast %cst_28 : f32 to vector<2x1024xf32>
    %42 = arith.addf %41, %40 : vector<2x1024xf32>
    %43 = tpu.reciprocal %42 {approx = true} : vector<2x1024xf32> -> vector<2x1024xf32>
    %44 = arith.truncf %43 : vector<2x1024xf32> to vector<2x1024xbf16>
    %c0_29 = arith.constant 0 : index
    %c0_30 = arith.constant 0 : index
    %45 = vector.load %arg11[%c0_29, %c0_30] : memref<2x1024xbf16, #tpu.memory_space<vmem>>, vector<2x1024xbf16>
    tpu.vector_store %arg11[%c0_29, %c0_30], %44 {strides = array<i32>} : memref<2x1024xbf16, #tpu.memory_space<vmem>>, vector<2x1024xbf16>,
    return
  }
  func.func @transform_0(%arg0: i32) -> (i32, i32) {
    %c0_i32 = arith.constant 0 : i32
    %c0_i32_0 = arith.constant 0 : i32
    return %arg0, %c0_i32 : i32, i32
  }
  func.func @transform_1(%arg0: i32) -> (i32, i32) {
    %c0_i32 = arith.constant 0 : i32
    %c0_i32_0 = arith.constant 0 : i32
    %c0_i32_1 = arith.constant 0 : i32
    return %c0_i32, %c0_i32_0 : i32, i32
  }
  func.func @transform_2(%arg0: i32) -> (i32, i32) {
    %c0_i32 = arith.constant 0 : i32
    %c0_i32_0 = arith.constant 0 : i32
    %c0_i32_1 = arith.constant 0 : i32
    return %c0_i32, %c0_i32_0 : i32, i32
  }
  func.func @transform_3(%arg0: i32) -> (i32, i32) {
    %c0_i32 = arith.constant 0 : i32
    %c0_i32_0 = arith.constant 0 : i32
    %c0_i32_1 = arith.constant 0 : i32
    return %c0_i32, %c0_i32_0 : i32, i32
  }
  func.func @transform_4(%arg0: i32) -> (i32, i32) {
    %c0_i32 = arith.constant 0 : i32
    %c0_i32_0 = arith.constant 0 : i32
    %c0_i32_1 = arith.constant 0 : i32
    return %c0_i32, %c0_i32_0 : i32, i32
  }
  func.func @transform_5(%arg0: i32) -> (i32, i32) {
    %c0_i32 = arith.constant 0 : i32
    %c0_i32_0 = arith.constant 0 : i32
    %c0_i32_1 = arith.constant 0 : i32
    return %c0_i32, %c0_i32_0 : i32, i32
  }
  func.func @transform_6(%arg0: i32) -> (i32, i32) {
    %c0_i32 = arith.constant 0 : i32
    %c0_i32_0 = arith.constant 0 : i32
    %c0_i32_1 = arith.constant 0 : i32
    return %c0_i32, %c0_i32_0 : i32, i32
  }
  func.func @transform_7(%arg0: i32) -> (i32, i32) {
    %c0_i32 = arith.constant 0 : i32
    %c0_i32_0 = arith.constant 0 : i32
    %c0_i32_1 = arith.constant 0 : i32
    return %c0_i32, %c0_i32_0 : i32, i32
  }
  func.func @transform_8(%arg0: i32) -> (i32, i32) {
    %c0_i32 = arith.constant 0 : i32
    %c0_i32_0 = arith.constant 0 : i32
    %c0_i32_1 = arith.constant 0 : i32
    return %c0_i32, %c0_i32_0 : i32, i32
  }
  func.func @transform_9(%arg0: i32) -> (i32, i32) {
    %c0_i32 = arith.constant 0 : i32
    %c0_i32_0 = arith.constant 0 : i32
    return %arg0, %c0_i32 : i32, i32
  }
  func.func @transform_10(%arg0: i32) -> (i32, i32) {
    %c0_i32 = arith.constant 0 : i32
    %c0_i32_0 = arith.constant 0 : i32
    return %arg0, %c0_i32 : i32, i32
  }
  func.func @transform_11(%arg0: i32) -> (i32, i32) {
    %c0_i32 = arith.constant 0 : i32
    %c0_i32_0 = arith.constant 0 : i32
    return %arg0, %c0_i32 : i32, i32
  }
}

</mosaic_0001>

<bundles_post_ra>
// kernel: tpu_custom_call.1
= control target key start
LH: loop header
LB: loop body
LE: loop exit
PB: predicated region body
PF: predicated region fallthrough
CT: control target
= control target key end

     0   :  { %17 = vsyncpa [#allocation3], 0  ;;  %s2935_s0 = inlined_call_operand.vmem [shape: f32[2,1024], index: 0, kind: input, shape index: {}]   ;;  %s2936_s1 = inlined_call_operand.vmem [shape: bf16[1024,32], index: 1, kind: input, shape index: {}]   ;;  %s2937_s2 = inlined_call_operand.vmem [shape: f32[1,32], index: 2, kind: input, shape index: {}]   ;;  %s2938_s3 = inlined_call_operand.vmem [shape: bf16[32,16], index: 3, kind: input, shape index: {}]   ;;  %s2939_s4 = inlined_call_operand.vmem [shape: f32[1,16], index: 4, kind: input, shape index: {}]   ;;  %s2940_s5 = inlined_call_operand.vmem [shape: bf16[8,256], index: 5, kind: input, shape index: {}]   ;;  %s2941_s6 = inlined_call_operand.vmem [shape: f32[1,256], index: 6, kind: input, shape index: {}]   ;;  %s2942_s7 = inlined_call_operand.hbm [shape: bf16[256,1024], index: 7, kind: input, shape index: {}]   ;;  %s2943_s8 = inlined_call_operand.vmem [shape: f32[1,1024], index: 8, kind: input, shape index: {}]   ;;  %s2944_s9 = inlined_call_operand.vmem [shape: f32[2,8], index: 9, kind: input, shape index: {}]   ;;  %s2945_s10 = inlined_call_operand.hbm [shape: bf16[2,1024], index: 10, kind: output, shape index: {0}]   ;;  %s2946_s11 = inlined_call_operand.hbm [shape: f32[2,16], index: 11, kind: output, shape index: {1}]  }
   0x1   :  { %18 = vsyncpa [#allocation4], 0 }
   0x2   :  { %19 = vsyncpa [#allocation7], 0  ;;  %s2549_s17 = smov [#allocation2]   ;;  %s2477_s21 = scalar_lea.hbm %s2942_s7, 16384 }
   0x3   :  { %s39_s18 = sshll.u32 %s2549_s17, 4  ;;  %p2478_p0 = scmp.ne.s32.totalorder %s2942_s7, %s2477_s21  ;;  %s40_s18 = int_to_ptr.vmem [resolvable:$true] %s39_s18 }
   0x4   :  { %p2481_p1 = scmp.lt.u32.totalorder %s2477_s21, %s2942_s7 }
   0x6   :  { %p2483_p2 = pnand %p2481_p1, %p2478_p0 }
   0x8   :  { %2486 = shalt.err (!%p2483_p2)
}
   0x9   :  { %s2487_s26 = scalar_lea.vmem %s40_s18, 16384  ;;  %p2492_p4 = scmp.lt.s32.totalorder %s40_s18, %s40_s18 }
   0xa   :  { %p2488_p3 = scmp.ne.s32.totalorder %s40_s18, %s2487_s26  ;;  %p2493_p5 = scmp.lt.s32.totalorder %s2487_s26, %s2487_s26 }
   0xc   :  { %p2494_p6 = por %p2493_p5, %p2492_p4 }
   0xe   :  { %p2495_p7 = pnand %p2494_p6, %p2488_p3 }
  0x10   :  { %2498 = shalt.err (!%p2495_p7)
}
  0x11   :  { %s2550_s27 = smov 512   ;;  %s2551_s28 = smov 32  }
  0x12   :  { %45 = dma.hbm_to_vmem [thread:$0]  %s2942_s7, 16384, %s40_s18, [#allocation3], %s2550_s27, %s2550_s27, %s2551_s28  }
  0x13   :  { %2543 = dma.done.wait [#allocation3], 16384  }
  0x14   :  { %2544 = vsyncadd [#allocation3], 4294950912  ;;  %v2373_v0 = vld [vmem:[%s2936_s1 + $0x40] sm:$0xff]   ;;  %v2377_v4 = vld [vmem:[%s2936_s1 + $0x48] sm:$0xff]   ;;  %v2552_v22 = vmov 1983009808   ;;  %v62_v24 = vlaneseq }
  0x15   :  { %v2374_v1 = vld [vmem:[%s2936_s1 + $0xc0] sm:$0xff]   ;;  %2262 = vmatprep.subr.bf16.mxu0 %v2373_v0  ;;  %v2378_v5 = vld [vmem:[%s2936_s1 + $0xc8] sm:$0xff]   ;;  %v2381_v8 = vld [vmem:[%s2936_s1 + $0x50] sm:$0xff]   ;;  %v60_v23 = vunpack.c.l.s4 %v2552_v22  ;;  %vm2554_vm0 = vmmov 0   ;;  %s2555_s27 = smov 8   ;;  %vm812_vm1 = vcmask 261120  }
  0x16   :  { %v2375_v2 = vld [vmem:[%s2936_s1] sm:$0xff]   ;;  %2284 = vmatprep.subr.bf16.mxu1 %v2374_v1  ;;  %v2379_v6 = vld [vmem:[%s2936_s1 + $0x8] sm:$0xff]   ;;  %v2382_v9 = vld [vmem:[%s2936_s1 + $0xd0] sm:$0xff]   ;;  %v2711_v30 = vshrl.u32 %v62_v24, 7  ;;  %vm895_vm2 = vcmask 1043456   ;;  %vm856_vm3 = vcmask 123904  }
  0x17   :  { %v2376_v3 = vld [vmem:[%s2936_s1 + $0x80] sm:$0xff]   ;;  %2263 = vmatpush3.bf16.msra.mxu0 %v2375_v2  ;;  %v2380_v7 = vld [vmem:[%s2936_s1 + $0x88] sm:$0xff]   ;;  %v2383_v10 = vld [vmem:[%s2936_s1 + $0x10] sm:$0xff]   ;;  %v61_v29 = vunpack.c.0.s8 %v60_v23  ;;  %vm891_vm4 = vcmask 64512  }
  0x18   :  { %2285 = vmatpush3.bf16.msra.mxu1 %v2376_v3  ;;  %2264 = vmatprep.subr.bf16.mxu0 %v2377_v4  ;;  %v2384_v11 = vld [vmem:[%s2936_s1 + $0x90] sm:$0xff]   ;;  %v2385_v12 = vld [vmem:[%s2936_s1 + $0x58] sm:$0xff]   ;;  %v2389_v16 = vld [vmem:[%s2936_s1 + $0x60] sm:$0xff]  }
  0x19   :  { %2286 = vmatprep.subr.bf16.mxu1 %v2378_v5  ;;  %v2386_v13 = vld [vmem:[%s2936_s1 + $0xd8] sm:$0xff]   ;;  %v2390_v17 = vld [vmem:[%s2936_s1 + $0xe0] sm:$0xff]   ;;  %v2393_v20 = vld [vmem:[%s2936_s1 + $0x68] sm:$0xff]   ;;  %v2726_v35 = vsub.s32 %v61_v29, %v2711_v30 }
  0x1a   :  { %v2387_v14 = vld [vmem:[%s2936_s1 + $0x18] sm:$0xff]   ;;  %v2391_v18 = vld [vmem:[%s2936_s1 + $0x20] sm:$0xff]   ;;  %v2394_v21 = vld [vmem:[%s2936_s1 + $0xe8] sm:$0xff]  }
  0x1b   :  { %2265 = vmatpush3.bf16.msra.mxu0 %v2379_v6  ;;  %v2388_v15 = vld [vmem:[%s2936_s1 + $0x98] sm:$0xff]   ;;  %v2392_v19 = vld [vmem:[%s2936_s1 + $0xa0] sm:$0xff]   ;;  %v2395_v25 = vld [vmem:[%s2936_s1 + $0x28] sm:$0xff]  }
  0x1c   :  { %2287 = vmatpush3.bf16.msra.mxu1 %v2380_v7  ;;  %2266 = vmatprep.subr.bf16.mxu0 %v2381_v8  ;;  %v2396_v26 = vld [vmem:[%s2936_s1 + $0xa8] sm:$0xff]   ;;  %v2397_v27 = vld [vmem:[%s2936_s1 + $0x70] sm:$0xff]   ;;  %v2401_v33 = vld [vmem:[%s2936_s1 + $0x78] sm:$0xff]  }
  0x1d   :  { %2288 = vmatprep.subr.bf16.mxu1 %v2382_v9  ;;  %v2398_v28 = vld [vmem:[%s2936_s1 + $0xf0] sm:$0xff]   ;;  %v2402_v34 = vld [vmem:[%s2936_s1 + $0xf8] sm:$0xff]   ;;  %v54_v38 = vld [vmem:[%s2935_s0] sm:$0xff] }
  0x1e   :  { %v2399_v31 = vld [vmem:[%s2936_s1 + $0x30] sm:$0xff]   ;;  %v2403_v36 = vld [vmem:[%s2936_s1 + $0x38] sm:$0xff]   ;;  %v65_v39 = vrot.slane %v54_v38, %v2726_v35  ;;  %v58_v40 = vcombine.high %v54_v38, %v54_v38  ;;  %v2406_v41 = vld [vmem:[%s2936_s1 + $0x140] sm:$0xff]  }
  0x1f   :  { %2267 = vmatpush3.bf16.msra.mxu0 %v2383_v10  ;;  %v2400_v32 = vld [vmem:[%s2936_s1 + $0xb0] sm:$0xff]   ;;  %v2404_v37 = vld [vmem:[%s2936_s1 + $0xb8] sm:$0xff]   ;;  %v2407_v42 = vld [vmem:[%s2936_s1 + $0x1c0] sm:$0xff]  }
  0x20   :  { %2289 = vmatpush3.bf16.msra.mxu1 %v2384_v11  ;;  %2268 = vmatprep.subr.bf16.mxu0 %v2385_v12  ;;  %v73_v43 = vcombine.high %v65_v39, %v65_v39  ;;  %v72_v44 = vrot.slane %v58_v40, %v2726_v35  ;;  %v100_v45 = vpack.c.bf16 %v65_v39, %v65_v39  ;;  %v2408_v46 = vld [vmem:[%s2936_s1 + $0x100] sm:$0xff]   ;;  %v2410_v51 = vld [vmem:[%s2936_s1 + $0x148] sm:$0xff]   ;;  %v2414_v56 = vld [vmem:[%s2936_s1 + $0x150] sm:$0xff]  }
  0x21   :  { %2290 = vmatprep.subr.bf16.mxu1 %v2386_v13  ;;  %v2409_v49 = vld [vmem:[%s2936_s1 + $0x180] sm:$0xff]   ;;  %v2411_v53 = vld [vmem:[%s2936_s1 + $0x1c8] sm:$0xff]   ;;  %v2415_v57 = vld [vmem:[%s2936_s1 + $0x1d0] sm:$0xff]  }
  0x22   :  { %v101_v47 = vpack.c.bf16 %v73_v43, %v73_v43  ;;  %v74_v48 = vcombine.high %v72_v44, %v72_v44  ;;  %v102_v50 = vpack.c.bf16 %v72_v44, %v72_v44  ;;  %v2412_v54 = vld [vmem:[%s2936_s1 + $0x108] sm:$0xff]   ;;  %v2416_v58 = vld [vmem:[%s2936_s1 + $0x110] sm:$0xff]   ;;  %v2418_v60 = vld [vmem:[%s2936_s1 + $0x158] sm:$0xff]  }
  0x23   :  { %2269 = vmatpush3.bf16.msra.mxu0 %v2387_v14  ;;  %v2413_v55 = vld [vmem:[%s2936_s1 + $0x188] sm:$0xff]   ;;  %v2417_v59 = vld [vmem:[%s2936_s1 + $0x190] sm:$0xff]   ;;  %v2419_v61 = vld [vmem:[%s2936_s1 + $0x1d8] sm:$0xff]  }
  0x24   :  { %2291 = vmatpush3.bf16.msra.mxu1 %v2388_v15  ;;  %2270 = vmatprep.subr.bf16.mxu0 %v2389_v16  ;;  %v103_v52 = vpack.c.bf16 %v74_v48, %v74_v48  ;;  %v2420_v62 = vld [vmem:[%s2936_s1 + $0x118] sm:$0xff]   ;;  %v2422_v0 = vld [vmem:[%s2936_s1 + $0x160] sm:$0xff]   ;;  %v2426_v4 = vld [vmem:[%s2936_s1 + $0x168] sm:$0xff]  }
  0x25   :  { %2292 = vmatprep.subr.bf16.mxu1 %v2390_v17  ;;  %659 = vmatprep.mubr.bf16.mxu0 %v101_v47  ;;  %v2421_v63 = vld [vmem:[%s2936_s1 + $0x198] sm:$0xff]   ;;  %v2423_v1 = vld [vmem:[%s2936_s1 + $0x1e0] sm:$0xff]   ;;  %v2427_v5 = vld [vmem:[%s2936_s1 + $0x1e8] sm:$0xff]  }
  0x26   :  { %699 = vmatprep.mubr.bf16.mxu1 %v103_v52  ;;  %v2424_v2 = vld [vmem:[%s2936_s1 + $0x120] sm:$0xff]   ;;  %v2428_v6 = vld [vmem:[%s2936_s1 + $0x128] sm:$0xff]   ;;  %v2430_v8 = vld [vmem:[%s2936_s1 + $0x170] sm:$0xff]  }
  0x27   :  { %2271 = vmatpush3.bf16.msra.mxu0 %v2391_v18  ;;  %v2425_v3 = vld [vmem:[%s2936_s1 + $0x1a0] sm:$0xff]   ;;  %v2429_v7 = vld [vmem:[%s2936_s1 + $0x1a8] sm:$0xff]   ;;  %v2431_v9 = vld [vmem:[%s2936_s1 + $0x1f0] sm:$0xff]  }
  0x28   :  { %2293 = vmatpush3.bf16.msra.mxu1 %v2392_v19  ;;  %2272 = vmatprep.subr.bf16.mxu0 %v2393_v20  ;;  %v2432_v10 = vld [vmem:[%s2936_s1 + $0x130] sm:$0xff]   ;;  %v2434_v12 = vld [vmem:[%s2936_s1 + $0x178] sm:$0xff]   ;;  %v55_v15 = vld [vmem:[%s2935_s0 + $0x8] sm:$0xff] }
  0x29   :  { %2294 = vmatprep.subr.bf16.mxu1 %v2394_v21  ;;  %v2433_v11 = vld [vmem:[%s2936_s1 + $0x1b0] sm:$0xff]   ;;  %v2435_v13 = vld [vmem:[%s2936_s1 + $0x1f8] sm:$0xff]   ;;  %v82_v16 = vrot.slane %v55_v15, %v2726_v35  ;;  %v75_v17 = vcombine.high %v55_v15, %v55_v15  ;;  %v861_v29 = vld [vmem:[%s2944_s9] sm:$0x3] }
  0x2a   :  { %v2436_v14 = vld [vmem:[%s2936_s1 + $0x138] sm:$0xff]   ;;  %863 = vrot.lane.b32.xlu0 %v861_v29, %s2555_s27 }
  0x2b   :  { %2273 = vmatpush3.bf16.msra.mxu0 %v2395_v25  ;;  %v2437_v18 = vld [vmem:[%s2936_s1 + $0x1b8] sm:$0xff]   ;;  %v90_v19 = vcombine.high %v82_v16, %v82_v16  ;;  %v89_v20 = vrot.slane %v75_v17, %v2726_v35  ;;  %v104_v21 = vpack.c.bf16 %v82_v16, %v82_v16 }
  0x2c   :  { %2295 = vmatpush3.bf16.msra.mxu1 %v2396_v26  ;;  %2274 = vmatprep.subr.bf16.mxu0 %v2397_v27  ;;  %v2439_v26 = vld [vmem:[%s2938_s3] sm:$0xff]   ;;  %v2553_v27 = vmov 0.0  }
  0x2d   :  { %2296 = vmatprep.subr.bf16.mxu1 %v2398_v28  ;;  %v105_v22 = vpack.c.bf16 %v90_v19, %v90_v19  ;;  %v91_v23 = vcombine.high %v89_v20, %v89_v20  ;;  %v106_v24 = vpack.c.bf16 %v89_v20, %v89_v20  ;;  %v2440_v28 = vld [vmem:[%s2938_s3 + $0x8] sm:$0xff]   ;;  %v963_v20 = vld [vmem:[#allocation2 + $0x80] sm:$0xff] }
  0x2f   :  { %2275 = vmatpush3.bf16.msra.mxu0 %v2399_v31  ;;  %v107_v25 = vpack.c.bf16 %v91_v23, %v91_v23 }
  0x30   :  { %2297 = vmatpush3.bf16.msra.mxu1 %v2400_v32  ;;  %2276 = vmatprep.subr.bf16.mxu0 %v2401_v33  ;;  %v2057_v32 = vld [vmem:[%s2937_s2] ss:$0 sm:$0xff] }
  0x31   :  { %2298 = vmatprep.subr.bf16.mxu1 %v2402_v34 }
  0x33   :  { %2277 = vmatpush3.bf16.msra.mxu0 %v2403_v36 }
  0x34   :  { %2299 = vmatpush3.bf16.msra.mxu1 %v2404_v37  ;;  %2306 = vmatprep.subr.bf16.mxu0 %v2406_v41 }
  0x35   :  { %2328 = vmatprep.subr.bf16.mxu1 %v2407_v42 }
  0x36   :  { %660 = vmatmul.mubr.bf16.vlgmr.msra.gmra.mrb[0].mxu0 %v100_v45 }
  0x37   :  { %2307 = vmatpush3.bf16.msra.mxu0 %v2408_v46  ;;  %700 = vmatmul.mubr.bf16.vlgmr.msra.gmra.mrb[0].mxu1 %v102_v50 }
  0x38   :  { %2308 = vmatprep.subr.bf16.mxu0 %v2410_v51  ;;  %2329 = vmatpush3.bf16.msra.mxu1 %v2409_v49 }
  0x39   :  { %2330 = vmatprep.subr.bf16.mxu1 %v2411_v53  ;;  %739 = vmatprep.mubr.bf16.mxu0 %v105_v22 }
  0x3a   :  { %779 = vmatprep.mubr.bf16.mxu1 %v107_v25 }
  0x3b   :  { %2309 = vmatpush3.bf16.msra.mxu0 %v2412_v54 }
  0x3c   :  { %2310 = vmatprep.subr.bf16.mxu0 %v2414_v56  ;;  %2331 = vmatpush3.bf16.msra.mxu1 %v2413_v55 }
  0x3d   :  { %2332 = vmatprep.subr.bf16.mxu1 %v2415_v57 }
  0x3f   :  { %2311 = vmatpush3.bf16.msra.mxu0 %v2416_v58  ;;  %v873_v58 = vld [vmem:[%s2940_s5] sm:$0xff] }
  0x40   :  { %2312 = vmatprep.subr.bf16.mxu0 %v2418_v60  ;;  %2333 = vmatpush3.bf16.msra.mxu1 %v2417_v59  ;;  %v2127_v59 = vcombine.high %v873_v58, %v873_v58  ;;  %v2126_v60 = vcombine.low %v873_v58, %v873_v58 }
  0x41   :  { %2334 = vmatprep.subr.bf16.mxu1 %v2419_v61 }
  0x42   :  { %v897_v61 = vsel %vm895_vm2, %v2126_v60, 0  ;;  %v1039_v60 = vld [vmem:[#allocation2 + $0x2e0] sm:$0xff] }
  0x43   :  { %2313 = vmatpush3.bf16.msra.mxu0 %v2420_v62  ;;  %v2122_v62 = vld [vmem:[%s2939_s4] ss:$0 sm:$0xff]  ;;  %s2557_s4 = smov 120  }
  0x44   :  { %2314 = vmatprep.subr.bf16.mxu0 %v2422_v0  ;;  %2335 = vmatpush3.bf16.msra.mxu1 %v2421_v63 }
  0x45   :  { %2336 = vmatprep.subr.bf16.mxu1 %v2423_v1 }
  0x47   :  { %2315 = vmatpush3.bf16.msra.mxu0 %v2424_v2 }
  0x48   :  { %2316 = vmatprep.subr.bf16.mxu0 %v2426_v4  ;;  %2337 = vmatpush3.bf16.msra.mxu1 %v2425_v3 }
  0x49   :  { %2338 = vmatprep.subr.bf16.mxu1 %v2427_v5 }
  0x4b   :  { %2317 = vmatpush3.bf16.msra.mxu0 %v2428_v6  ;;  %v2556_v6 = vmov 0  }
  0x4c   :  { %2318 = vmatprep.subr.bf16.mxu0 %v2430_v8  ;;  %2339 = vmatpush3.bf16.msra.mxu1 %v2429_v7  ;;  %v947_v7 = vld [vmem:[#allocation2] sm:$0xff] }
  0x4d   :  { %2340 = vmatprep.subr.bf16.mxu1 %v2431_v9  ;;  %v951_v8 = vld [vmem:[#allocation2 + $0x20] sm:$0xff]  ;;  %v2862_v9 = vld [vmem:[#allocation2 + $0x8] sm:$0xff] }
  0x4f   :  { %2319 = vmatpush3.bf16.msra.mxu0 %v2432_v10  ;;  %v2130_v10 = vcombine.low %v947_v7, %v951_v8 }
  0x50   :  { %2320 = vmatprep.subr.bf16.mxu0 %v2434_v12  ;;  %2341 = vmatpush3.bf16.msra.mxu1 %v2433_v11  ;;  %v2131_v11 = vcombine.high %v947_v7, %v951_v8  ;;  %v2864_v12 = vld [vmem:[#allocation2 + $0x28] sm:$0xff] }
  0x51   :  { %2342 = vmatprep.subr.bf16.mxu1 %v2435_v13  ;;  %v955_v13 = vld [vmem:[#allocation2 + $0x40] sm:$0xff]  ;;  %v2132_v15 = vcombine.low %v2862_v9, %v2864_v12  ;;  %v2133_v16 = vcombine.high %v2862_v9, %v2864_v12 }
  0x53   :  { %2321 = vmatpush3.bf16.msra.mxu0 %v2436_v14  ;;  %v959_v14 = vld [vmem:[#allocation2 + $0x60] sm:$0xff] }
  0x54   :  { %2343 = vmatpush3.bf16.msra.mxu1 %v2437_v18  ;;  %2353 = vmatprep.subr.bf16.mxu0 %v2553_v27  ;;  %v2139_v17 = vcombine.high %v955_v13, %v959_v14  ;;  %v2138_v19 = vcombine.low %v955_v13, %v959_v14 }
  0x55   :  { %2128 = vmatprep.subr.msk.bf16.mxu1 %vm895_vm2, %v2127_v59  ;;  %v1035_v59 = vld [vmem:[#allocation2 + $0x2c0] sm:$0xff] }
  0x56   :  { %740 = vmatmul.mubr.bf16.vlgmr.msra.gmra.mrb[4].mxu0 %v104_v21  ;;  %v967_v21 = vld [vmem:[#allocation2 + $0xa0] sm:$0xff] }
  0x57   :  { %780 = vmatmul.mubr.bf16.vlgmr.msra.gmra.mrb[4].mxu1 %v106_v24  ;;  %2354 = vmatpush3.bf16.msra.mxu0 %v2439_v26  ;;  %v2147_v23 = vcombine.high %v963_v20, %v967_v21  ;;  %v2146_v25 = vcombine.low %v963_v20, %v967_v21  ;;  %v971_v26 = vld [vmem:[#allocation2 + $0xc0] sm:$0xff]  ;;  %v972_v21 = vld [vmem:[#allocation2 + $0xc8] sm:$0xff] }
  0x58   :  { %2355 = vmatprep.subr.bf16.mxu0 %v2553_v27  ;;  %2357 = vmatprep.mubr.msk.bf16.mxu0 %vm2554_vm0, %v2553_v27  ;;  %v975_v27 = vld [vmem:[#allocation2 + $0xe0] sm:$0xff] }
  0x59   :  { %903 = vmatpush1.bf16.msra.mxu1 %v897_v61  ;;  %934 = vmatprep.mubr.bf16.mxu1 %v2556_v6  ;;  %v2154_v29 = vcombine.low %v971_v26, %v975_v27  ;;  %v2219_v61 = vcombine.high %v1035_v59, %v1039_v60 }
  0x5a   :  { %1798 = vmatprep.subr.bf16.mxu1 %v2133_v16 }
  0x5b   :  { %2356 = vmatpush3.bf16.msra.mxu0 %v2440_v28  ;;  %v2155_v28 = vcombine.high %v971_v26, %v975_v27 }
  0x5c   :  { %1757 = vmatprep.subr.bf16.mxu0 %v2131_v11  ;;  %v960_v11 = vld [vmem:[#allocation2 + $0x68] sm:$0xff] }
  0x9c   :  { %v864_v18 = vpop.permute.xlu0 %863 }
 0x109   :  { %v2278_v31 = vpop.f32.mrb[0].mxu0 }
 0x10a   :  { %v2279_v33 = vpop.f32.mrb[1].mxu0  ;;  %v2300_v34 = vpop.f32.mrb[0].mxu1 }
 0x10b   :  { %v2280_v35 = vadd.f32 %v2279_v33, %v2278_v31  ;;  %v2281_v36 = vpop.f32.mrb[2].mxu0  ;;  %v2301_v37 = vpop.f32.mrb[1].mxu1  ;;  %v979_v31 = vld [vmem:[#allocation2 + $0x100] sm:$0xff] }
 0x10c   :  { %v2282_v38 = vpop.f32.mrb[3].mxu0  ;;  %v2302_v40 = vadd.f32 %v2301_v37, %v2300_v34  ;;  %v2303_v41 = vpop.f32.mrb[2].mxu1  ;;  %v991_v36 = vld [vmem:[#allocation2 + $0x160] sm:$0xff] }
 0x10d   :  { %v662_v39 = vadd.f32 %v2280_v35, %v2057_v32  ;;  %v2304_v42 = vpop.f32.mrb[3].mxu1  ;;  %v983_v32 = vld [vmem:[#allocation2 + $0x120] sm:$0xff] }
 0x10e   :  { %v2163_v33 = vcombine.high %v979_v31, %v983_v32  ;;  %v2162_v34 = vcombine.low %v979_v31, %v983_v32  ;;  %v987_v35 = vld [vmem:[#allocation2 + $0x140] sm:$0xff]  ;;  %v1000_v31 = vld [vmem:[#allocation2 + $0x1a8] sm:$0xff] }
 0x10f   :  { %v702_v43 = vadd.f32 %v2302_v40, %v662_v39  ;;  %v2171_v37 = vcombine.high %v987_v35, %v991_v36  ;;  %v2170_v38 = vcombine.low %v987_v35, %v991_v36  ;;  %v995_v39 = vld [vmem:[#allocation2 + $0x180] sm:$0xff]  ;;  %v1008_v35 = vld [vmem:[#allocation2 + $0x1e8] sm:$0xff] }
 0x110   :  { %v999_v40 = vld [vmem:[#allocation2 + $0x1a0] sm:$0xff] }
 0x111   :  { %v2179_v41 = vcombine.high %v995_v39, %v999_v40  ;;  %v2178_v42 = vcombine.low %v995_v39, %v999_v40  ;;  %v1016_v39 = vld [vmem:[#allocation2 + $0x228] sm:$0xff] }
 0x129   :  { %v2322_v44 = vpop.f32.mrb[4].mxu0 }
 0x12a   :  { %v2323_v45 = vpop.f32.mrb[5].mxu0  ;;  %v2344_v46 = vpop.f32.mrb[4].mxu1 }
 0x12b   :  { %v2324_v47 = vadd.f32 %v2323_v45, %v2322_v44  ;;  %v2325_v48 = vpop.f32.mrb[6].mxu0  ;;  %v2345_v49 = vpop.f32.mrb[5].mxu1  ;;  %v1007_v44 = vld [vmem:[#allocation2 + $0x1e0] sm:$0xff] }
 0x12c   :  { %v2326_v50 = vpop.f32.mrb[7].mxu0  ;;  %v2346_v52 = vadd.f32 %v2345_v49, %v2344_v46  ;;  %v2347_v53 = vpop.f32.mrb[6].mxu1  ;;  %v1015_v48 = vld [vmem:[#allocation2 + $0x220] sm:$0xff] }
 0x12d   :  { %v742_v51 = vadd.f32 %v2324_v47, %v702_v43  ;;  %v2348_v54 = vpop.f32.mrb[7].mxu1  ;;  %v1003_v43 = vld [vmem:[#allocation2 + $0x1c0] sm:$0xff] }
 0x12e   :  { %v2187_v45 = vcombine.high %v1003_v43, %v1007_v44  ;;  %v2186_v46 = vcombine.low %v1003_v43, %v1007_v44  ;;  %v1011_v47 = vld [vmem:[#allocation2 + $0x200] sm:$0xff]  ;;  %v1024_v43 = vld [vmem:[#allocation2 + $0x268] sm:$0xff] }
 0x12f   :  { %v782_v55 = vadd.f32 %v2346_v52, %v742_v51  ;;  %v2195_v49 = vcombine.high %v1011_v47, %v1015_v48  ;;  %v2194_v50 = vcombine.low %v1011_v47, %v1015_v48  ;;  %v1019_v51 = vld [vmem:[#allocation2 + $0x240] sm:$0xff]  ;;  %v1032_v47 = vld [vmem:[#allocation2 + $0x2a8] sm:$0xff] }
 0x130   :  { %v1023_v52 = vld [vmem:[#allocation2 + $0x260] sm:$0xff] }
 0x131   :  { %v787_v56 = vmax.f32 %v782_v55, 0.0  ;;  %v2203_v53 = vcombine.high %v1019_v51, %v1023_v52  ;;  %v2202_v54 = vcombine.low %v1019_v51, %v1023_v52  ;;  %v1027_v55 = vld [vmem:[#allocation2 + $0x280] sm:$0xff]  ;;  %v1040_v51 = vld [vmem:[#allocation2 + $0x2e8] sm:$0xff] }
 0x133   :  { %v788_v57 = vpack.c.bf16 %v787_v56, %v787_v56  ;;  %v1031_v56 = vld [vmem:[#allocation2 + $0x2a0] sm:$0xff] }
 0x134   :  { %v2210_v58 = vcombine.low %v1027_v55, %v1031_v56 }
 0x135   :  { %2358 = vmatmul.mubr.msk.bf16.vlgmr.msra.gmra.mrb[8].mxu0 %vm812_vm1, %v788_v57  ;;  %v2211_v57 = vcombine.high %v1027_v55, %v1031_v56  ;;  %v1048_v55 = vld [vmem:[#allocation2 + $0x328] sm:$0xff] }
 0x136   :  { %1758 = vmatpush1.bf16.msra.mxu0 %v2130_v10  ;;  %v956_v10 = vld [vmem:[#allocation2 + $0x48] sm:$0xff] }
 0x137   :  { %1759 = vmatprep.subr.bf16.mxu0 %v2139_v17  ;;  %v2141_v16 = vcombine.high %v956_v10, %v960_v11  ;;  %v964_v17 = vld [vmem:[#allocation2 + $0x88] sm:$0xff] }
 0x13a   :  { %1760 = vmatpush1.bf16.msra.mxu0 %v2138_v19  ;;  %v2140_v19 = vcombine.low %v956_v10, %v960_v11  ;;  %v1071_v10 = vld [vmem:[#allocation2 + $0x3e0] sm:$0xff]  ;;  %v1068_v11 = vld [vmem:[#allocation2 + $0x3c8] sm:$0xff] }
 0x13b   :  { %1761 = vmatprep.subr.bf16.mxu0 %v2147_v23 }
 0x13e   :  { %1762 = vmatpush1.bf16.msra.mxu0 %v2146_v25  ;;  %v984_v25 = vld [vmem:[#allocation2 + $0x128] sm:$0xff] }
 0x13f   :  { %1763 = vmatprep.subr.bf16.mxu0 %v2155_v28  ;;  %v988_v28 = vld [vmem:[#allocation2 + $0x148] sm:$0xff] }
 0x142   :  { %1764 = vmatpush1.bf16.msra.mxu0 %v2154_v29  ;;  %v992_v29 = vld [vmem:[#allocation2 + $0x168] sm:$0xff] }
 0x143   :  { %1765 = vmatprep.subr.bf16.mxu0 %v2163_v33  ;;  %v2173_v12 = vcombine.high %v988_v28, %v992_v29  ;;  %v2172_v32 = vcombine.low %v988_v28, %v992_v29  ;;  %v882_v28 = vsub.s32 1, %v2711_v30 }
 0x146   :  { %1766 = vmatpush1.bf16.msra.mxu0 %v2162_v34  ;;  %v1004_v34 = vld [vmem:[#allocation2 + $0x1c8] sm:$0xff] }
 0x147   :  { %1767 = vmatprep.subr.bf16.mxu0 %v2171_v37  ;;  %v2189_v37 = vcombine.high %v1004_v34, %v1008_v35  ;;  %v2188_v40 = vcombine.low %v1004_v34, %v1008_v35 }
 0x14a   :  { %1768 = vmatpush1.bf16.msra.mxu0 %v2170_v38  ;;  %v1012_v38 = vld [vmem:[#allocation2 + $0x208] sm:$0xff] }
 0x14b   :  { %1769 = vmatprep.subr.bf16.mxu0 %v2179_v41  ;;  %v2197_v41 = vcombine.high %v1012_v38, %v1016_v39  ;;  %v2196_v44 = vcombine.low %v1012_v38, %v1016_v39  ;;  %v961_v38 = vld [vmem:[#allocation2 + $0x70] sm:$0xff]  ;;  %v958_v39 = vld [vmem:[#allocation2 + $0x58] sm:$0xff] }
 0x14e   :  { %1770 = vmatpush1.bf16.msra.mxu0 %v2178_v42  ;;  %v1020_v42 = vld [vmem:[#allocation2 + $0x248] sm:$0xff] }
 0x14f   :  { %1771 = vmatprep.subr.bf16.mxu0 %v2187_v45  ;;  %v2205_v45 = vcombine.high %v1020_v42, %v1024_v43  ;;  %v2204_v48 = vcombine.low %v1020_v42, %v1024_v43  ;;  %v965_v43 = vld [vmem:[#allocation2 + $0x90] sm:$0xff] }
 0x152   :  { %1772 = vmatpush1.bf16.msra.mxu0 %v2186_v46  ;;  %v1028_v46 = vld [vmem:[#allocation2 + $0x288] sm:$0xff] }
 0x153   :  { %1773 = vmatprep.subr.bf16.mxu0 %v2195_v49  ;;  %v2213_v49 = vcombine.high %v1028_v46, %v1032_v47  ;;  %v2212_v52 = vcombine.low %v1028_v46, %v1032_v47  ;;  %v969_v46 = vld [vmem:[#allocation2 + $0xb0] sm:$0xff]  ;;  %v966_v47 = vld [vmem:[#allocation2 + $0x98] sm:$0xff] }
 0x156   :  { %1774 = vmatpush1.bf16.msra.mxu0 %v2194_v50  ;;  %v1036_v50 = vld [vmem:[#allocation2 + $0x2c8] sm:$0xff] }
 0x157   :  { %1775 = vmatprep.subr.bf16.mxu0 %v2203_v53  ;;  %v2221_v53 = vcombine.high %v1036_v50, %v1040_v51  ;;  %v2220_v56 = vcombine.low %v1036_v50, %v1040_v51  ;;  %v2151_v51 = vcombine.high %v965_v43, %v969_v46 }
 0x15a   :  { %1776 = vmatpush1.bf16.msra.mxu0 %v2202_v54  ;;  %v1044_v54 = vld [vmem:[#allocation2 + $0x308] sm:$0xff] }
 0x15b   :  { %1777 = vmatprep.subr.bf16.mxu0 %v2211_v57  ;;  %v2229_v57 = vcombine.high %v1044_v54, %v1048_v55 }
 0x15e   :  { %1778 = vmatpush1.bf16.msra.mxu0 %v2210_v58  ;;  %v1052_v58 = vld [vmem:[#allocation2 + $0x348] sm:$0xff] }
 0x15f   :  { %1779 = vmatprep.subr.bf16.mxu0 %v2219_v61 }
 0x208   :  { %v850_v63 = vpop.f32.mrb[8].mxu0 }
 0x209   :  { %v2858_v0 = vadd.f32 %v2122_v62, %v850_v63  ;;  %v2359_v1 = vpop.f32.mrb[9].mxu0  ;;  %v2218_v62 = vcombine.low %v1035_v59, %v1039_v60  ;;  %v1043_v63 = vld [vmem:[#allocation2 + $0x300] sm:$0xff]  ;;  %v1056_v59 = vld [vmem:[#allocation2 + $0x368] sm:$0xff]  ;;  %v2228_v60 = vcombine.low %v1044_v54, %v1048_v55  ;;  %v977_v54 = vld [vmem:[#allocation2 + $0xf0] sm:$0xff] }
 0x20a   :  { %v853_v2 = vpop.f32.mrb[10].mxu0  ;;  %v1047_v1 = vld [vmem:[#allocation2 + $0x320] sm:$0xff]  ;;  %v2237_v61 = vcombine.high %v1052_v58, %v1056_v59  ;;  %v974_v55 = vld [vmem:[#allocation2 + $0xd8] sm:$0xff] }
 0x20b   :  { %v858_v3 = vmul.f32 0.5, %v2858_v0  ;;  %v2360_v4 = vpop.f32.mrb[11].mxu0  ;;  %857 = vst.msk [vmem:[#allocation6] sm:$0x3] %vm856_vm3, %v2858_v0  ;;  %v2227_v2 = vcombine.high %v1043_v63, %v1047_v1  ;;  %1780 = vmatpush1.bf16.msra.mxu0 %v2218_v62  ;;  %v2236_v62 = vcombine.low %v1052_v58, %v1056_v59 }
 0x20c   :  { %v1051_v4 = vld [vmem:[#allocation2 + $0x340] sm:$0xff] }
 0x20d   :  { %v859_v5 = vmul.f32 1.442695, %v858_v3  ;;  %v2226_v3 = vcombine.low %v1043_v63, %v1047_v1  ;;  %1781 = vmatprep.subr.bf16.mxu0 %v2227_v2  ;;  %v1059_v63 = vld [vmem:[#allocation2 + $0x380] sm:$0xff]  ;;  %v1060_v2 = vld [vmem:[#allocation2 + $0x388] sm:$0xff] }
 0x20e   :  { %v1063_v1 = vld [vmem:[#allocation2 + $0x3a0] sm:$0xff] }
 0x20f   :  { %2443 = vpow2.f32 %v859_v5  ;;  %v1055_v5 = vld [vmem:[#allocation2 + $0x360] sm:$0xff]  ;;  %1782 = vmatpush1.bf16.msra.mxu0 %v2226_v3  ;;  %v2243_v3 = vcombine.high %v1059_v63, %v1063_v1 }
 0x210   :  { %v2235_v6 = vcombine.high %v1051_v4, %v1055_v5  ;;  %v2234_v7 = vcombine.low %v1051_v4, %v1055_v5  ;;  %v1064_v4 = vld [vmem:[#allocation2 + $0x3a8] sm:$0xff]  ;;  %v2242_v5 = vcombine.low %v1059_v63, %v1063_v1  ;;  %v982_v63 = vld [vmem:[#allocation2 + $0x118] sm:$0xff] }
 0x211   :  { %v986_v1 = vld [vmem:[#allocation2 + $0x138] sm:$0xff] }
 0x212   :  { %1783 = vmatprep.subr.bf16.mxu0 %v2235_v6  ;;  %v2244_v6 = vcombine.low %v1060_v2, %v1064_v4 }
 0x213   :  { %1784 = vmatpush1.bf16.msra.mxu0 %v2234_v7  ;;  %v2245_v7 = vcombine.high %v1060_v2, %v1064_v4 }
 0x214   :  { %1785 = vmatprep.subr.bf16.mxu0 %v2243_v3 }
 0x217   :  { %1786 = vmatpush1.bf16.msra.mxu0 %v2242_v5  ;;  %v2169_v5 = vcombine.high %v982_v63, %v986_v1 }
 0x219   :  { %v2444_v22 = vpop.eup %2443 }
 0x21a   :  { %v866_v24 = vmul.f32 %v2444_v22, %v864_v18  ;;  %v968_v18 = vld [vmem:[#allocation2 + $0xa8] sm:$0xff] }
 0x21b   :  { %v2149_v20 = vcombine.high %v964_v17, %v968_v18  ;;  %v976_v22 = vld [vmem:[#allocation2 + $0xe8] sm:$0xff]  ;;  %v2148_v23 = vcombine.low %v964_v17, %v968_v18 }
 0x21c   :  { %868 = vrot.lane.b32.xlu0 %v866_v24, %s2557_s4  ;;  %v2157_v24 = vcombine.high %v972_v21, %v976_v22  ;;  %v2156_v26 = vcombine.low %v972_v21, %v976_v22  ;;  %v950_v21 = vld [vmem:[#allocation2 + $0x18] sm:$0xff] }
 0x28e   :  { %v869_v8 = vpop.permute.xlu0 %868 }
 0x28f   :  { %v871_v13 = vadd.f32 %v869_v8, %v2858_v0  ;;  %v980_v0 = vld [vmem:[#allocation2 + $0x108] sm:$0xff]  ;;  %v1067_v8 = vld [vmem:[#allocation2 + $0x3c0] sm:$0xff] }
 0x290   :  { %v2165_v27 = vcombine.high %v980_v0, %v984_v25  ;;  %v2164_v9 = vcombine.low %v980_v0, %v984_v25 }
 0x291   :  { %v872_v14 = vpack.c.bf16 %v871_v13, %v871_v13  ;;  %v2251_v13 = vcombine.high %v1067_v8, %v1071_v10 }
 0x293   :  { %2129 = vmatmul.mubr.msk.bf16.vlgmr.msra.gmra.mrb[8].mxu1 %vm891_vm4, %v872_v14  ;;  %v1072_v14 = vld [vmem:[#allocation2 + $0x3e8] sm:$0xff]  ;;  %1787 = vmatprep.subr.bf16.mxu0 %v2251_v13  ;;  %v2168_v13 = vcombine.low %v982_v63, %v986_v1 }
 0x294   :  { %1799 = vmatpush1.bf16.msra.mxu1 %v2132_v15  ;;  %v996_v15 = vld [vmem:[#allocation2 + $0x188] sm:$0xff]  ;;  %v2252_v17 = vcombine.low %v1068_v11, %v1072_v14  ;;  %v2253_v18 = vcombine.high %v1068_v11, %v1072_v14 }
 0x295   :  { %1800 = vmatprep.subr.bf16.mxu1 %v2141_v16  ;;  %v2181_v33 = vcombine.high %v996_v15, %v1000_v31  ;;  %v2180_v36 = vcombine.low %v996_v15, %v1000_v31  ;;  %v2250_v16 = vcombine.low %v1067_v8, %v1071_v10  ;;  %v990_v8 = vld [vmem:[#allocation2 + $0x158] sm:$0xff] }
 0x296   :  { %v994_v10 = vld [vmem:[#allocation2 + $0x178] sm:$0xff] }
 0x297   :  { %1788 = vmatpush1.bf16.msra.mxu0 %v2250_v16  ;;  %v2177_v16 = vcombine.high %v990_v8, %v994_v10 }
 0x298   :  { %1801 = vmatpush1.bf16.msra.mxu1 %v2140_v19  ;;  %v949_v19 = vld [vmem:[#allocation2 + $0x10] sm:$0xff] }
 0x299   :  { %1802 = vmatprep.subr.bf16.mxu1 %v2149_v20  ;;  %v953_v20 = vld [vmem:[#allocation2 + $0x30] sm:$0xff] }
 0x29a   :  { %v2134_v22 = vcombine.low %v949_v19, %v953_v20 }
 0x29c   :  { %1803 = vmatpush1.bf16.msra.mxu1 %v2148_v23  ;;  %v2135_v23 = vcombine.high %v949_v19, %v953_v20  ;;  %v998_v19 = vld [vmem:[#allocation2 + $0x198] sm:$0xff] }
 0x29d   :  { %1804 = vmatprep.subr.bf16.mxu1 %v2157_v24  ;;  %v954_v24 = vld [vmem:[#allocation2 + $0x38] sm:$0xff] }
 0x29e   :  { %v2136_v0 = vcombine.low %v950_v21, %v954_v24  ;;  %v2137_v25 = vcombine.high %v950_v21, %v954_v24  ;;  %1839 = vmatprep.subr.bf16.mxu0 %v2135_v23  ;;  %v1002_v20 = vld [vmem:[#allocation2 + $0x1b8] sm:$0xff] }
 0x29f   :  { %v2185_v24 = vcombine.high %v998_v19, %v1002_v20 }
 0x2a0   :  { %1805 = vmatpush1.bf16.msra.mxu1 %v2156_v26  ;;  %v878_v26 = vsub.s32 0, %v2711_v30 }
 0x2a1   :  { %1806 = vmatprep.subr.bf16.mxu1 %v2165_v27  ;;  %v874_v27 = vld [vmem:[%s2941_s6] sm:$0x3]  ;;  %s2558_s6 = smov [#allocation6]  }
 0x2a2   :  { %v879_v29 = vrot.slane %v874_v27, %v878_v26  ;;  %s2044_s13 = sshll.u32 %s2558_s6, 4  ;;  %s2045_s13 = int_to_ptr.vmem [resolvable:$true] %s2044_s13 }
 0x2a3   :  { %s2499_s14 = scalar_lea.vmem %s2045_s13, 32  ;;  %p2504_p9 = scmp.lt.s32.totalorder %s2045_s13, %s2045_s13 }
 0x2a4   :  { %1807 = vmatpush1.bf16.msra.mxu1 %v2164_v9  ;;  %v883_v9 = vrot.slane %v874_v27, %v882_v28  ;;  %v1006_v27 = vld [vmem:[#allocation2 + $0x1d8] sm:$0xff]  ;;  %p2500_p8 = scmp.ne.s32.totalorder %s2045_s13, %s2499_s14  ;;  %p2505_p10 = scmp.lt.s32.totalorder %s2499_s14, %s2499_s14 }
 0x2a5   :  { %1808 = vmatprep.subr.bf16.mxu1 %v2173_v12 }
 0x2a6   :  { %p2506_p11 = por %p2505_p10, %p2504_p9 }
 0x2a8   :  { %1809 = vmatpush1.bf16.msra.mxu1 %v2172_v32  ;;  %p2507_p12 = pnand %p2506_p11, %p2500_p8 }
 0x2a9   :  { %1810 = vmatprep.subr.bf16.mxu1 %v2181_v33 }
 0x2ac   :  { %1811 = vmatpush1.bf16.msra.mxu1 %v2180_v36 }
 0x2ad   :  { %1812 = vmatprep.subr.bf16.mxu1 %v2189_v37  ;;  %v957_v37 = vld [vmem:[#allocation2 + $0x50] sm:$0xff] }
 0x2b0   :  { %1813 = vmatpush1.bf16.msra.mxu1 %v2188_v40  ;;  %v962_v40 = vld [vmem:[#allocation2 + $0x78] sm:$0xff] }
 0x2b1   :  { %1814 = vmatprep.subr.bf16.mxu1 %v2197_v41  ;;  %v2144_v50 = vcombine.low %v958_v39, %v962_v40 }
 0x2b4   :  { %1815 = vmatpush1.bf16.msra.mxu1 %v2196_v44  ;;  %v2143_v44 = vcombine.high %v957_v37, %v961_v38 }
 0x2b5   :  { %1816 = vmatprep.subr.bf16.mxu1 %v2205_v45  ;;  %v2145_v45 = vcombine.high %v958_v39, %v962_v40  ;;  %v1021_v40 = vld [vmem:[#allocation2 + $0x250] sm:$0xff] }
 0x2b8   :  { %1817 = vmatpush1.bf16.msra.mxu1 %v2204_v48  ;;  %v970_v48 = vld [vmem:[#allocation2 + $0xb8] sm:$0xff] }
 0x2b9   :  { %1818 = vmatprep.subr.bf16.mxu1 %v2213_v49  ;;  %v2142_v49 = vcombine.low %v957_v37, %v961_v38  ;;  %v2152_v58 = vcombine.low %v966_v47, %v970_v48 }
 0x2bc   :  { %1819 = vmatpush1.bf16.msra.mxu1 %v2212_v52  ;;  %v2153_v52 = vcombine.high %v966_v47, %v970_v48 }
 0x2bd   :  { %1820 = vmatprep.subr.bf16.mxu1 %v2221_v53  ;;  %v973_v53 = vld [vmem:[#allocation2 + $0xd0] sm:$0xff] }
 0x2be   :  { %v2159_v59 = vcombine.high %v973_v53, %v977_v54  ;;  %v2158_v2 = vcombine.low %v973_v53, %v977_v54 }
 0x2c0   :  { %1821 = vmatpush1.bf16.msra.mxu1 %v2220_v56  ;;  %v978_v56 = vld [vmem:[#allocation2 + $0xf8] sm:$0xff] }
 0x2c1   :  { %1822 = vmatprep.subr.bf16.mxu1 %v2229_v57  ;;  %v2150_v57 = vcombine.low %v965_v43, %v969_v46  ;;  %v2160_v3 = vcombine.low %v974_v55, %v978_v56  ;;  %v1022_v43 = vld [vmem:[#allocation2 + $0x258] sm:$0xff] }
 0x2c4   :  { %1823 = vmatpush1.bf16.msra.mxu1 %v2228_v60  ;;  %v2161_v60 = vcombine.high %v974_v55, %v978_v56 }
 0x2c5   :  { %1824 = vmatprep.subr.bf16.mxu1 %v2237_v61  ;;  %v981_v61 = vld [vmem:[#allocation2 + $0x110] sm:$0xff] }
 0x2c8   :  { %1825 = vmatpush1.bf16.msra.mxu1 %v2236_v62  ;;  %v985_v62 = vld [vmem:[#allocation2 + $0x130] sm:$0xff] }
 0x2c9   :  { %1826 = vmatprep.subr.bf16.mxu1 %v2245_v7  ;;  %v2167_v4 = vcombine.high %v981_v61, %v985_v62  ;;  %v993_v7 = vld [vmem:[#allocation2 + $0x170] sm:$0xff]  ;;  %v2166_v11 = vcombine.low %v981_v61, %v985_v62 }
 0x2cc   :  { %1827 = vmatpush1.bf16.msra.mxu1 %v2244_v6  ;;  %v989_v6 = vld [vmem:[#allocation2 + $0x150] sm:$0xff] }
 0x2cd   :  { %1828 = vmatprep.subr.bf16.mxu1 %v2253_v18  ;;  %v2175_v14 = vcombine.high %v989_v6, %v993_v7  ;;  %v1001_v18 = vld [vmem:[#allocation2 + $0x1b0] sm:$0xff]  ;;  %v2174_v21 = vcombine.low %v989_v6, %v993_v7 }
 0x2d0   :  { %1829 = vmatpush1.bf16.msra.mxu1 %v2252_v17  ;;  %v997_v17 = vld [vmem:[#allocation2 + $0x190] sm:$0xff] }
 0x2d1   :  { %1880 = vmatprep.subr.bf16.mxu1 %v2137_v25  ;;  %v2183_v23 = vcombine.high %v997_v17, %v1001_v18  ;;  %v1009_v25 = vld [vmem:[#allocation2 + $0x1f0] sm:$0xff] }
 0x366   :  { %v936_v12 = vpop.f32.mrb[8].mxu1 }
 0x367   :  { %v937_v15 = vadd.f32 %v936_v12, %v879_v29  ;;  %v938_v31 = vpop.f32.mrb[9].mxu1  ;;  %v1010_v29 = vld [vmem:[#allocation2 + $0x1f8] sm:$0xff]  ;;  %v2184_v12 = vcombine.low %v998_v19, %v1002_v20 }
 0x368   :  { %v939_v32 = vadd.f32 %v938_v31, %v883_v9  ;;  %v940_v33 = vpop.f32.mrb[10].mxu1  ;;  %v2182_v9 = vcombine.low %v997_v17, %v1001_v18  ;;  %v2193_v31 = vcombine.high %v1006_v27, %v1010_v29  ;;  %v2192_v37 = vcombine.low %v1006_v27, %v1010_v29 }
 0x369   :  { %v943_v34 = vmax.f32 %v937_v15, 0.0  ;;  %v941_v35 = vpop.f32.mrb[11].mxu1  ;;  %v1017_v33 = vld [vmem:[#allocation2 + $0x230] sm:$0xff] }
 0x36a   :  { %v944_v36 = vmax.f32 %v939_v32, 0.0  ;;  %v1013_v32 = vld [vmem:[#allocation2 + $0x210] sm:$0xff]  ;;  %v1018_v35 = vld [vmem:[#allocation2 + $0x238] sm:$0xff] }
 0x36b   :  { %v2883_v42 = vpack.c.bf16 %v943_v34, %v943_v34  ;;  %v1014_v34 = vld [vmem:[#allocation2 + $0x218] sm:$0xff]  ;;  %v2199_v38 = vcombine.high %v1013_v32, %v1017_v33 }
 0x36c   :  { %v946_v41 = vpack.c.bf16 %v944_v36, %v944_v36  ;;  %v2201_v39 = vcombine.high %v1014_v34, %v1018_v35  ;;  %v2200_v46 = vcombine.low %v1014_v34, %v1018_v35 }
 0x36e   :  { %1789 = vmatprep.mubr.bf16.mxu0 %v946_v41  ;;  %1830 = vmatprep.mubr.bf16.mxu1 %v946_v41 }
 0x36f   :  { %1790 = vmatmul.mubr.bf16.vlgmr.msra.gmra.mrb[12].mxu0 %v2883_v42  ;;  %1831 = vmatmul.mubr.bf16.vlgmr.msra.gmra.mrb[12].mxu1 %v2883_v42 }
 0x370   :  { %1840 = vmatpush1.bf16.msra.mxu0 %v2134_v22  ;;  %1881 = vmatpush1.bf16.msra.mxu1 %v2136_v0  ;;  %v2176_v22 = vcombine.low %v990_v8, %v994_v10  ;;  %v1005_v0 = vld [vmem:[#allocation2 + $0x1d0] sm:$0xff] }
 0x371   :  { %1871 = vmatprep.mubr.bf16.mxu0 %v946_v41  ;;  %1912 = vmatprep.mubr.bf16.mxu1 %v946_v41  ;;  %v2191_v15 = vcombine.high %v1005_v0, %v1009_v25  ;;  %v2190_v36 = vcombine.low %v1005_v0, %v1009_v25  ;;  %v1025_v41 = vld [vmem:[#allocation2 + $0x270] sm:$0xff] }
 0x372   :  { %1841 = vmatprep.subr.bf16.mxu0 %v2143_v44  ;;  %1882 = vmatprep.subr.bf16.mxu1 %v2145_v45  ;;  %v1026_v44 = vld [vmem:[#allocation2 + $0x278] sm:$0xff]  ;;  %v2198_v45 = vcombine.low %v1013_v32, %v1017_v33  ;;  %v2207_v47 = vcombine.high %v1021_v40, %v1025_v41  ;;  %v2206_v53 = vcombine.low %v1021_v40, %v1025_v41 }
 0x373   :  { %v2209_v48 = vcombine.high %v1022_v43, %v1026_v44  ;;  %v2208_v54 = vcombine.low %v1022_v43, %v1026_v44 }
 0x374   :  { %1842 = vmatpush1.bf16.msra.mxu0 %v2142_v49  ;;  %1883 = vmatpush1.bf16.msra.mxu1 %v2144_v50  ;;  %v1029_v49 = vld [vmem:[#allocation2 + $0x290] sm:$0xff] }
 0x375   :  { %1843 = vmatprep.subr.bf16.mxu0 %v2151_v51  ;;  %1884 = vmatprep.subr.bf16.mxu1 %v2153_v52  ;;  %v1033_v50 = vld [vmem:[#allocation2 + $0x2b0] sm:$0xff]  ;;  %v1030_v51 = vld [vmem:[#allocation2 + $0x298] sm:$0xff] }
 0x376   :  { %v1034_v52 = vld [vmem:[#allocation2 + $0x2b8] sm:$0xff]  ;;  %v2215_v55 = vcombine.high %v1029_v49, %v1033_v50  ;;  %v2214_v61 = vcombine.low %v1029_v49, %v1033_v50 }
 0x377   :  { %v2217_v56 = vcombine.high %v1030_v51, %v1034_v52  ;;  %v2216_v62 = vcombine.low %v1030_v51, %v1034_v52 }
 0x378   :  { %1844 = vmatpush1.bf16.msra.mxu0 %v2150_v57  ;;  %1885 = vmatpush1.bf16.msra.mxu1 %v2152_v58  ;;  %v1037_v57 = vld [vmem:[#allocation2 + $0x2d0] sm:$0xff] }
 0x379   :  { %1845 = vmatprep.subr.bf16.mxu0 %v2159_v59  ;;  %1886 = vmatprep.subr.bf16.mxu1 %v2161_v60  ;;  %v1041_v58 = vld [vmem:[#allocation2 + $0x2f0] sm:$0xff]  ;;  %v1038_v59 = vld [vmem:[#allocation2 + $0x2d8] sm:$0xff] }
 0x37a   :  { %v1042_v60 = vld [vmem:[#allocation2 + $0x2f8] sm:$0xff]  ;;  %v2223_v63 = vcombine.high %v1037_v57, %v1041_v58  ;;  %v2222_v6 = vcombine.low %v1037_v57, %v1041_v58 }
 0x37b   :  { %v2225_v1 = vcombine.high %v1038_v59, %v1042_v60  ;;  %v2224_v7 = vcombine.low %v1038_v59, %v1042_v60 }
 0x37c   :  { %1846 = vmatpush1.bf16.msra.mxu0 %v2158_v2  ;;  %1887 = vmatpush1.bf16.msra.mxu1 %v2160_v3  ;;  %v1045_v2 = vld [vmem:[#allocation2 + $0x310] sm:$0xff] }
 0x37d   :  { %1847 = vmatprep.subr.bf16.mxu0 %v2167_v4  ;;  %1888 = vmatprep.subr.bf16.mxu1 %v2169_v5  ;;  %v1049_v3 = vld [vmem:[#allocation2 + $0x330] sm:$0xff]  ;;  %v1046_v4 = vld [vmem:[#allocation2 + $0x318] sm:$0xff] }
 0x37e   :  { %v1050_v5 = vld [vmem:[#allocation2 + $0x338] sm:$0xff]  ;;  %v2231_v8 = vcombine.high %v1045_v2, %v1049_v3  ;;  %v2230_v17 = vcombine.low %v1045_v2, %v1049_v3 }
 0x37f   :  { %v2233_v10 = vcombine.high %v1046_v4, %v1050_v5  ;;  %v2232_v18 = vcombine.low %v1046_v4, %v1050_v5 }
 0x380   :  { %1848 = vmatpush1.bf16.msra.mxu0 %v2166_v11  ;;  %1889 = vmatpush1.bf16.msra.mxu1 %v2168_v13  ;;  %v1053_v11 = vld [vmem:[#allocation2 + $0x350] sm:$0xff] }
 0x381   :  { %1849 = vmatprep.subr.bf16.mxu0 %v2175_v14  ;;  %1890 = vmatprep.subr.bf16.mxu1 %v2177_v16  ;;  %v1057_v13 = vld [vmem:[#allocation2 + $0x370] sm:$0xff]  ;;  %v1054_v14 = vld [vmem:[#allocation2 + $0x358] sm:$0xff] }
 0x382   :  { %v1058_v16 = vld [vmem:[#allocation2 + $0x378] sm:$0xff]  ;;  %v2239_v19 = vcombine.high %v1053_v11, %v1057_v13  ;;  %v2238_v0 = vcombine.low %v1053_v11, %v1057_v13 }
 0x383   :  { %v2241_v20 = vcombine.high %v1054_v14, %v1058_v16  ;;  %v2240_v25 = vcombine.low %v1054_v14, %v1058_v16 }
 0x384   :  { %1850 = vmatpush1.bf16.msra.mxu0 %v2174_v21  ;;  %1891 = vmatpush1.bf16.msra.mxu1 %v2176_v22  ;;  %v1061_v21 = vld [vmem:[#allocation2 + $0x390] sm:$0xff] }
 0x385   :  { %1851 = vmatprep.subr.bf16.mxu0 %v2183_v23  ;;  %1892 = vmatprep.subr.bf16.mxu1 %v2185_v24  ;;  %v1065_v22 = vld [vmem:[#allocation2 + $0x3b0] sm:$0xff]  ;;  %v1062_v23 = vld [vmem:[#allocation2 + $0x398] sm:$0xff] }
 0x386   :  { %v1066_v24 = vld [vmem:[#allocation2 + $0x3b8] sm:$0xff]  ;;  %v2247_v27 = vcombine.high %v1061_v21, %v1065_v22  ;;  %v2246_v32 = vcombine.low %v1061_v21, %v1065_v22 }
 0x387   :  { %v2249_v29 = vcombine.high %v1062_v23, %v1066_v24  ;;  %v2248_v33 = vcombine.low %v1062_v23, %v1066_v24 }
 0x388   :  { %1852 = vmatpush1.bf16.msra.mxu0 %v2182_v9  ;;  %1893 = vmatpush1.bf16.msra.mxu1 %v2184_v12  ;;  %v1069_v9 = vld [vmem:[#allocation2 + $0x3d0] sm:$0xff] }
 0x389   :  { %1853 = vmatprep.subr.bf16.mxu0 %v2191_v15  ;;  %1894 = vmatprep.subr.bf16.mxu1 %v2193_v31  ;;  %v1073_v12 = vld [vmem:[#allocation2 + $0x3f0] sm:$0xff]  ;;  %v1070_v15 = vld [vmem:[#allocation2 + $0x3d8] sm:$0xff] }
 0x38a   :  { %v1074_v31 = vld [vmem:[#allocation2 + $0x3f8] sm:$0xff]  ;;  %v2255_v34 = vcombine.high %v1069_v9, %v1073_v12 }
 0x38b   :  { %v2257_v35 = vcombine.high %v1070_v15, %v1074_v31 }
 0x38c   :  { %1854 = vmatpush1.bf16.msra.mxu0 %v2190_v36  ;;  %1895 = vmatpush1.bf16.msra.mxu1 %v2192_v37  ;;  %v2254_v36 = vcombine.low %v1069_v9, %v1073_v12  ;;  %v2256_v37 = vcombine.low %v1070_v15, %v1074_v31 }
 0x38d   :  { %1855 = vmatprep.subr.bf16.mxu0 %v2199_v38  ;;  %1896 = vmatprep.subr.bf16.mxu1 %v2201_v39 }
 0x390   :  { %1856 = vmatpush1.bf16.msra.mxu0 %v2198_v45  ;;  %1897 = vmatpush1.bf16.msra.mxu1 %v2200_v46 }
 0x391   :  { %1857 = vmatprep.subr.bf16.mxu0 %v2207_v47  ;;  %1898 = vmatprep.subr.bf16.mxu1 %v2209_v48 }
 0x394   :  { %1858 = vmatpush1.bf16.msra.mxu0 %v2206_v53  ;;  %1899 = vmatpush1.bf16.msra.mxu1 %v2208_v54 }
 0x395   :  { %1859 = vmatprep.subr.bf16.mxu0 %v2215_v55  ;;  %1900 = vmatprep.subr.bf16.mxu1 %v2217_v56 }
 0x398   :  { %1860 = vmatpush1.bf16.msra.mxu0 %v2214_v61  ;;  %1901 = vmatpush1.bf16.msra.mxu1 %v2216_v62 }
 0x399   :  { %1861 = vmatprep.subr.bf16.mxu0 %v2223_v63  ;;  %1902 = vmatprep.subr.bf16.mxu1 %v2225_v1 }
 0x39c   :  { %1862 = vmatpush1.bf16.msra.mxu0 %v2222_v6  ;;  %1903 = vmatpush1.bf16.msra.mxu1 %v2224_v7 }
 0x39d   :  { %1863 = vmatprep.subr.bf16.mxu0 %v2231_v8  ;;  %1904 = vmatprep.subr.bf16.mxu1 %v2233_v10 }
 0x3a0   :  { %1864 = vmatpush1.bf16.msra.mxu0 %v2230_v17  ;;  %1905 = vmatpush1.bf16.msra.mxu1 %v2232_v18 }
 0x3a1   :  { %1865 = vmatprep.subr.bf16.mxu0 %v2239_v19  ;;  %1906 = vmatprep.subr.bf16.mxu1 %v2241_v20 }
 0x3a4   :  { %1866 = vmatpush1.bf16.msra.mxu0 %v2238_v0  ;;  %1907 = vmatpush1.bf16.msra.mxu1 %v2240_v25 }
 0x3a5   :  { %1867 = vmatprep.subr.bf16.mxu0 %v2247_v27  ;;  %1908 = vmatprep.subr.bf16.mxu1 %v2249_v29 }
 0x3a8   :  { %1868 = vmatpush1.bf16.msra.mxu0 %v2246_v32  ;;  %1909 = vmatpush1.bf16.msra.mxu1 %v2248_v33 }
 0x3a9   :  { %1869 = vmatprep.subr.bf16.mxu0 %v2255_v34  ;;  %1910 = vmatprep.subr.bf16.mxu1 %v2257_v35 }
 0x3ac   :  { %1870 = vmatpush1.bf16.msra.mxu0 %v2254_v36  ;;  %1911 = vmatpush1.bf16.msra.mxu1 %v2256_v37 }
 0x3af   :  { %1872 = vmatmul.mubr.bf16.vlgmr.msra.gmra.mrb[16].mxu0 %v2883_v42  ;;  %1913 = vmatmul.mubr.bf16.vlgmr.msra.gmra.mrb[16].mxu1 %v2883_v42 }
 0x3b0   :  { %2510 = shalt.err (!%p2507_p12)
}
 0x3b1   :  { %s2511_s17 = scalar_lea.hbm %s2946_s11, 32 }
 0x3b2   :  { %p2512_p13 = scmp.ne.s32.totalorder %s2946_s11, %s2511_s17  ;;  %p2515_p0 = scmp.lt.u32.totalorder %s2511_s17, %s2946_s11 }
 0x3b4   :  { %p2517_p1 = pnand %p2515_p0, %p2512_p13 }
 0x3b6   :  { %2520 = shalt.err (!%p2517_p1)
}
 0x3b7   :  { %2047 = dma.vmem_to_hbm [thread:$0]  %s2045_s13, 32, %s2946_s11, [#allocation7]   ;;  %v1087_v42 = vsub.s32 2, %v2711_v30  ;;  %v1075_v38 = vld [vmem:[%s2943_s8] sm:$0xff]  ;;  %v1091_v39 = vsub.s32 3, %v2711_v30  ;;  %v1095_v24 = vsub.s32 4, %v2711_v30 }
 0x3b8   :  { %v1080_v40 = vrot.slane %v1075_v38, %v878_v26  ;;  %v1084_v43 = vrot.slane %v1075_v38, %v882_v28  ;;  %v2559_v8 = vmov 1966171168   ;;  %v1103_v0 = vsub.s32 6, %v2711_v30  ;;  %s2560_s8 = smov [#allocation5]  }
 0x3b9   :  { %v1088_v41 = vrot.slane %v1075_v38, %v1087_v42  ;;  %v1092_v44 = vrot.slane %v1075_v38, %v1091_v39  ;;  %v1982_v10 = vunpack.c.l.s4 %v2559_v8  ;;  %v1099_v25 = vsub.s32 5, %v2711_v30  ;;  %s2034_s11 = sshll.u32 %s2560_s8, 4  ;;  %s2035_s11 = int_to_ptr.vmem [resolvable:$true] %s2034_s11 }
 0x3ba   :  { %v1107_v27 = vsub.s32 7, %v2711_v30  ;;  %v1096_v29 = vrot.slane %v1075_v38, %v1095_v24  ;;  %v1104_v9 = vrot.slane %v1075_v38, %v1103_v0  ;;  %s2521_s1 = scalar_lea.vmem %s2035_s11, 128  ;;  %p2526_p3 = scmp.lt.s32.totalorder %s2035_s11, %s2035_s11 }
 0x3bb   :  { %v1983_v11 = vunpack.c.0.s8 %v1982_v10  ;;  %v1100_v12 = vrot.slane %v1075_v38, %v1099_v25  ;;  %p2522_p2 = scmp.ne.s32.totalorder %s2035_s11, %s2521_s1  ;;  %p2527_p4 = scmp.lt.s32.totalorder %s2521_s1, %s2521_s1 }
 0x3bc   :  { %v1108_v15 = vrot.slane %v1075_v38, %v1107_v27 }
 0x3bd   :  { %v2911_v16 = vsub.s32 %v1983_v11, %v2711_v30  ;;  %p2528_p5 = por %p2527_p4, %p2526_p3 }
 0x3bf   :  { %p2529_p6 = pnand %p2528_p5, %p2522_p2 }
 0x442   :  { %v1791_v45 = vpop.f32.mrb[12].mxu0  ;;  %v1832_v46 = vpop.f32.mrb[12].mxu1 }
 0x443   :  { %v1792_v47 = vadd.f32 %v1791_v45, %v1080_v40  ;;  %v1833_v48 = vadd.f32 %v1832_v46, %v1088_v41  ;;  %v1793_v49 = vpop.f32.mrb[13].mxu0  ;;  %v1834_v50 = vpop.f32.mrb[13].mxu1 }
 0x444   :  { %v1794_v51 = vadd.f32 %v1793_v49, %v1084_v43  ;;  %v1835_v52 = vadd.f32 %v1834_v50, %v1092_v44  ;;  %v1795_v53 = vpop.f32.mrb[14].mxu0  ;;  %v1836_v54 = vpop.f32.mrb[14].mxu1 }
 0x445   :  { %v1921_v55 = vsub.f32 0.0, %v1792_v47  ;;  %v1923_v56 = vsub.f32 0.0, %v1833_v48  ;;  %v1796_v57 = vpop.f32.mrb[15].mxu0  ;;  %v1837_v58 = vpop.f32.mrb[15].mxu1 }
 0x446   :  { %v1922_v26 = vsub.f32 0.0, %v1794_v51  ;;  %v1924_v59 = vsub.f32 0.0, %v1835_v52 }
 0x447   :  { %v1929_v60 = vmul.f32 1.442695, %v1921_v55  ;;  %v1933_v61 = vmul.f32 1.442695, %v1923_v56 }
 0x448   :  { %v1931_v28 = vmul.f32 1.442695, %v1922_v26  ;;  %v1935_v62 = vmul.f32 1.442695, %v1924_v59 }
 0x449   :  { %2445 = vpow2.f32 %v1929_v60 }
 0x44a   :  { %2447 = vpow2.f32 %v1933_v61 }
 0x44b   :  { %2449 = vpow2.f32 %v1931_v28 }
 0x44c   :  { %2451 = vpow2.f32 %v1935_v62 }
 0x453   :  { %v2446_v63 = vpop.eup %2445 }
 0x454   :  { %v2448_v1 = vpop.eup %2447  ;;  %v1945_v2 = vadd.f32 1.0, %v2446_v63 }
 0x455   :  { %v2450_v3 = vpop.eup %2449  ;;  %v1947_v4 = vadd.f32 1.0, %v2448_v1 }
 0x456   :  { %v2452_v5 = vpop.eup %2451  ;;  %2453 = vrcp.f32 %v1945_v2  ;;  %v1946_v6 = vadd.f32 1.0, %v2450_v3 }
 0x457   :  { %2455 = vrcp.f32 %v1947_v4  ;;  %v1948_v7 = vadd.f32 1.0, %v2452_v5 }
 0x458   :  { %2457 = vrcp.f32 %v1946_v6 }
 0x459   :  { %2459 = vrcp.f32 %v1948_v7 }
 0x460   :  { %v2454_v13 = vpop.eup %2453 }
 0x461   :  { %v2456_v14 = vpop.eup %2455 }
 0x462   :  { %v2458_v17 = vpop.eup %2457 }
 0x463   :  { %v2460_v18 = vpop.eup %2459  ;;  %v2258_v19 = vpack.c.bf16 %v2458_v17, %v2454_v13 }
 0x464   :  { %v2259_v20 = vpack.c.bf16 %v2460_v18, %v2456_v14 }
 0x465   :  { %v1987_v21 = vrot.slane %v2258_v19, %v2911_v16 }
 0x466   :  { %v1994_v22 = vrot.slane %v2259_v20, %v2911_v16 }
 0x468   :  { %v2009_v23 = vcombine.low %v1987_v21, %v1994_v22 }
 0x46a   :  { %v2017_v2 = vrot.slane %v2009_v23, %v2911_v16 }
 0x482   :  { %v1873_v31 = vpop.f32.mrb[16].mxu0  ;;  %v1914_v32 = vpop.f32.mrb[16].mxu1 }
 0x483   :  { %v1874_v33 = vadd.f32 %v1873_v31, %v1096_v29  ;;  %v1915_v34 = vadd.f32 %v1914_v32, %v1104_v9  ;;  %v1875_v35 = vpop.f32.mrb[17].mxu0  ;;  %v1916_v36 = vpop.f32.mrb[17].mxu1 }
 0x484   :  { %v1876_v37 = vadd.f32 %v1875_v35, %v1100_v12  ;;  %v1917_v42 = vadd.f32 %v1916_v36, %v1108_v15  ;;  %v1877_v39 = vpop.f32.mrb[18].mxu0  ;;  %v1918_v40 = vpop.f32.mrb[18].mxu1 }
 0x485   :  { %v1925_v41 = vsub.f32 0.0, %v1874_v33  ;;  %v1927_v43 = vsub.f32 0.0, %v1915_v34  ;;  %v1878_v44 = vpop.f32.mrb[19].mxu0  ;;  %v1919_v45 = vpop.f32.mrb[19].mxu1 }
 0x486   :  { %v1926_v46 = vsub.f32 0.0, %v1876_v37  ;;  %v1928_v30 = vsub.f32 0.0, %v1917_v42 }
 0x487   :  { %v1937_v47 = vmul.f32 1.442695, %v1925_v41  ;;  %v1941_v48 = vmul.f32 1.442695, %v1927_v43 }
 0x488   :  { %v1939_v49 = vmul.f32 1.442695, %v1926_v46  ;;  %v1943_v38 = vmul.f32 1.442695, %v1928_v30 }
 0x489   :  { %2461 = vpow2.f32 %v1937_v47 }
 0x48a   :  { %2463 = vpow2.f32 %v1941_v48 }
 0x48b   :  { %2465 = vpow2.f32 %v1939_v49 }
 0x48c   :  { %2467 = vpow2.f32 %v1943_v38 }
 0x493   :  { %v2462_v50 = vpop.eup %2461 }
 0x494   :  { %v2464_v51 = vpop.eup %2463  ;;  %v1949_v52 = vadd.f32 1.0, %v2462_v50 }
 0x495   :  { %v2466_v53 = vpop.eup %2465  ;;  %v1951_v54 = vadd.f32 1.0, %v2464_v51 }
 0x496   :  { %v2468_v55 = vpop.eup %2467  ;;  %2469 = vrcp.f32 %v1949_v52  ;;  %v1950_v56 = vadd.f32 1.0, %v2466_v53 }
 0x497   :  { %2471 = vrcp.f32 %v1951_v54  ;;  %v1952_v57 = vadd.f32 1.0, %v2468_v55 }
 0x498   :  { %2473 = vrcp.f32 %v1950_v56 }
 0x499   :  { %2475 = vrcp.f32 %v1952_v57 }
 0x4a0   :  { %v2470_v58 = vpop.eup %2469 }
 0x4a1   :  { %v2472_v26 = vpop.eup %2471 }
 0x4a2   :  { %v2474_v59 = vpop.eup %2473 }
 0x4a3   :  { %v2476_v60 = vpop.eup %2475  ;;  %v2260_v61 = vpack.c.bf16 %v2474_v59, %v2470_v58 }
 0x4a4   :  { %v2261_v28 = vpack.c.bf16 %v2476_v60, %v2472_v26 }
 0x4a5   :  { %v2001_v62 = vrot.slane %v2260_v61, %v2911_v16 }
 0x4a6   :  { %v2008_v63 = vrot.slane %v2261_v28, %v2911_v16 }
 0x4a8   :  { %v2010_v1 = vcombine.low %v2001_v62, %v2008_v63 }
 0x4aa   :  { %v2024_v3 = vrot.slane %v2010_v1, %v2911_v16 }
 0x4ac   :  { %v2025_v4 = vcombine.low %v2017_v2, %v2024_v3 }
 0x4ae   :  { %2027 = vst [vmem:[#allocation5] sm:$0xff] %v2025_v4 }
 0x4af   :  { %2532 = shalt.err (!%p2529_p6)
}
 0x4b0   :  { %s2533_s26 = scalar_lea.hbm %s2945_s10, 128 }
 0x4b1   :  { %p2534_p7 = scmp.ne.s32.totalorder %s2945_s10, %s2533_s26  ;;  %p2537_p8 = scmp.lt.u32.totalorder %s2533_s26, %s2945_s10 }
 0x4b3   :  { %p2539_p9 = pnand %p2537_p8, %p2534_p7 }
 0x4b5   :  { %2542 = shalt.err (!%p2539_p9)
}
 0x4b6   :  { %2037 = dma.vmem_to_hbm [thread:$0]  %s2035_s11, 128, %s2945_s10, [#allocation4]  }
 0x4b7   :  { %2545 = dma.done.wait [#allocation4], 128  }
 0x4b8   :  { %2546 = vsyncadd [#allocation4], 4294967168 }
 0x4b9   :  { %2547 = dma.done.wait [#allocation7], 32  }
 0x4ba   :  { %2548 = vsyncadd [#allocation7], 4294967264 }
 0x4bb   :  { %2054 = vsyncpa [#allocation3], 1 }
 0x4bc   :  { %2055 = vsyncpa [#allocation4], 1 }
 0x4bd   :  { %2056 = vsyncpa [#allocation7], 1 }

</bundles_post_ra>
